<compile_context>
chip_gen: v6e
topology: v6e:2x2x1
jax: 0.10.0
libtpu: 0.0.40
codegen_flags: <defaults>
</compile_context>

<pallas_src>
import jax
import jax.numpy as jnp
from jax.experimental import pallas as pl
from jax.experimental.pallas import tpu as pltpu


def _round_up(x, m):
    return ((x + m - 1) // m) * m


def _cdiv(a, b):
    return (a + b - 1) // b


def ntn_kernel(x_ref, e2_ref, w_all_ref, sel_ref, b_ref, out_ref):
    TB, F = e2_ref.shape
    C, K = sel_ref.shape
    KF = K * F
    cdt = w_all_ref.dtype        # MXU operand dtype (f32 or bf16)

    # ---- fused MXU matmul --------------------------------------------------
    # y[:, k*F+j]    = sum_i e1[:, i] * W[i, j, k]          (scoring projection)
    # y[:, KF + k]   = e1 @ Wb[:, :F].T + e2 @ Wb[:, F:].T  (block term)
    # y[:, KF+K:]    = 0                                     (lane padding)
    x = x_ref[...]                                                    # (TB, 2F)
    y = jnp.dot(x, w_all_ref[...], preferred_element_type=jnp.float32)  # (TB, C) f32

    # ---- lane-tile e2 over the scoring lanes, ones over block/pad lanes ----
    e2 = e2_ref[...].astype(jnp.float32)                              # (TB, F)
    if (128 % F == 0) and (KF % 128 == 0):
        r1 = 128 // F
        slab = jnp.concatenate([e2] * r1, axis=1)                     # (TB, 128)
        e2_t = jnp.concatenate([slab] * (KF // 128), axis=1)          # (TB, KF)
    else:
        e2_t = jnp.concatenate([e2] * K, axis=1)                      # (TB, KF)
    mult = jnp.concatenate(
        [e2_t, jnp.ones((TB, C - KF), jnp.float32)], axis=1)          # (TB, C)

    prod = y * mult                                                   # f32 VPU

    # ---- second MXU matmul: per-k reduction + block pass-through -----------
    scores = jnp.dot(prod.astype(cdt), sel_ref[...],
                     preferred_element_type=jnp.float32)              # (TB, K)

    out_ref[...] = jnp.maximum(scores + b_ref[...], 0.0).astype(out_ref.dtype)


def prepare_ntn_weights(weight_matrix, weight_matrix_block, bias, *,
                        compute_dtype=jnp.bfloat16):
    """One-time weight preparation (hoisted out of the per-call path).

    weight_matrix: (F, F, K); weight_matrix_block: (K, 2F); bias: (K, 1).
    Returns (w_all, sel, b_row).  `compute_dtype` is the MXU operand dtype
    (bfloat16 recommended on v6e/v7x; accumulation is always f32)."""
    F, _, K = weight_matrix.shape
    KF = K * F
    C = _round_up(KF + K, 128)

    # w2d[i, k*F + j] = W[i, j, k]
    w2d = jnp.transpose(weight_matrix, (0, 2, 1)).reshape(F, KF)
    wb1 = jnp.transpose(weight_matrix_block[:, :F])                   # (F, K)
    wb2 = jnp.transpose(weight_matrix_block[:, F:])                   # (F, K)

    w_all = jnp.zeros((2 * F, C), jnp.float32)
    w_all = w_all.at[:F, :KF].set(w2d)
    w_all = w_all.at[:F, KF:KF + K].set(wb1)
    w_all = w_all.at[F:, KF:KF + K].set(wb2)

    # Selector: rows k*F+j -> column k (block sum of the bilinear product);
    #           rows KF+k  -> column k (block-term pass-through); rest zero.
    sel = jnp.zeros((C, K), jnp.float32)
    sel = sel.at[:KF, :].set(jnp.repeat(jnp.eye(K, dtype=jnp.float32), F, axis=0))
    sel = sel.at[KF:KF + K, :].set(jnp.eye(K, dtype=jnp.float32))

    b_row = jnp.transpose(bias).astype(jnp.float32)                   # (1, K)
    return (w_all.astype(compute_dtype), sel.astype(compute_dtype), b_row)


def ntn_forward_batched(e1_rows, e2_rows, prepared, *, batch_tile=128):
    """Batched forward. e1_rows, e2_rows: (B, F) rows. Returns (B, K) f32."""
    w_all, sel, b_row = prepared
    B, F = e1_rows.shape
    K = b_row.shape[1]
    C = sel.shape[0]
    cdt = w_all.dtype

    # Batch tile: multiple of 8, and keep >= 2 grid steps when the batch allows
    # so v7x can shard the "parallel" axis across both TensorCores.
    TB = _round_up(min(max(batch_tile, 8), max(B, 8)), 8)
    nsteps = _cdiv(B, TB)
    if nsteps < 2 and B > 8:
        TB = _round_up(_cdiv(B, 2), 8)
        nsteps = _cdiv(B, TB)
    Bp = nsteps * TB

    # Fused input x = [e1 | e2]; e2 is also passed separately (tiny DMA) so the
    # kernel never lane-slices x.
    x = jnp.concatenate([e1_rows, e2_rows], axis=1).astype(cdt)       # (B, 2F)
    e2c = e2_rows.astype(cdt)
    if Bp != B:
        pad = Bp - B
        x = jnp.pad(x, ((0, pad), (0, 0)))
        e2c = jnp.pad(e2c, ((0, pad), (0, 0)))

    out = pl.pallas_call(
        ntn_kernel,
        out_shape=jax.ShapeDtypeStruct((Bp, K), jnp.float32),
        grid_spec=pl.GridSpec(
            grid=(nsteps,),
            in_specs=[
                pl.BlockSpec((TB, 2 * F), lambda b: (b, 0)),   # x = [e1|e2]
                pl.BlockSpec((TB, F), lambda b: (b, 0)),       # e2 rows
                pl.BlockSpec((2 * F, C), lambda b: (0, 0)),    # w_all (resident)
                pl.BlockSpec((C, K), lambda b: (0, 0)),        # selector (resident)
                pl.BlockSpec((1, K), lambda b: (0, 0)),        # bias (resident)
            ],
            out_specs=pl.BlockSpec((TB, K), lambda b: (b, 0)),
        ),
        compiler_params=pltpu.CompilerParams(
            dimension_semantics=("parallel",)),
    )(x, e2c, w_all, sel, b_row)
    return out[:B]


def neural_tensor_layer_single(gcn_embedding_1, gcn_embedding_2,
                               weight_matrix, weight_matrix_block, bias):
    """Single-pair forward matching the PyTorch module exactly.

    Kept in plain XLA per the performance review (B=1 cannot amortize a
    pallas_call's launch/pipeline cost). Inputs are (F, 1) columns; returns (K, 1)."""
    F, _, K = weight_matrix.shape
    scoring = (gcn_embedding_1.T @ weight_matrix.reshape(F, F * K)).reshape(F, K)
    scoring = scoring.T @ gcn_embedding_2
    combined = jnp.concatenate([gcn_embedding_1, gcn_embedding_2], axis=0)
    block = weight_matrix_block @ combined
    return jnp.maximum(scoring + block + bias, 0.0)


def _reference_batched(E1, E2, W, Wb, b):
    """Pure-JAX batched reference (high-precision einsums)."""
    hp = jax.lax.Precision.HIGHEST
    scoring = jnp.einsum('bi,ijk,bj->bk', E1, W, E2, precision=hp)
    block = jnp.einsum('kc,bc->bk', Wb, jnp.concatenate([E1, E2], axis=1),
                       precision=hp)
    return jnp.maximum(scoring + block + b.T, 0.0)


def _xavier_uniform(key, shape):
    # torch.nn.init.xavier_uniform_-style bound (deterministic synthetic init).
    if len(shape) == 3:
        fan_in = shape[1] * shape[2]
        fan_out = shape[0] * shape[2]
    else:
        fan_in, fan_out = shape[1], shape[0]
    bound = (6.0 / (fan_in + fan_out)) ** 0.5
    return jax.random.uniform(key, shape, jnp.float32, -bound, bound)


if __name__ == "__main__":
    F = 32    # args['filters_3']
    K = 16    # args['ntn_neurons']
    B = 512   # batched embedding pairs -> 4 grid steps at batch_tile=128

    key = jax.random.PRNGKey(0)
    k1, k2, k3, k4, k5 = jax.random.split(key, 5)

    weight_matrix = _xavier_uniform(k1, (F, F, K))
    weight_matrix_block = _xavier_uniform(k2, (K, 2 * F))
    bias = _xavier_uniform(k3, (K, 1))

    E1 = jax.random.normal(k4, (B, F), jnp.float32)
    E2 = jax.random.normal(k5, (B, F), jnp.float32)

    ref_b = _reference_batched(E1, E2, weight_matrix, weight_matrix_block, bias)

    # --- f32 MXU operands: exact parity with the reference -------------------
    prep_f32 = prepare_ntn_weights(weight_matrix, weight_matrix_block, bias,
                                   compute_dtype=jnp.float32)
    out_f32 = jax.block_until_ready(
        ntn_forward_batched(E1, E2, prep_f32, batch_tile=128))
    assert out_f32.shape == (B, K)
    assert bool(jnp.allclose(out_f32, ref_b, atol=1e-4, rtol=1e-4))

    # --- bf16 MXU operands (f32 accumulation): perf default on v6e/v7x -------
    prep_bf16 = prepare_ntn_weights(weight_matrix, weight_matrix_block, bias,
                                    compute_dtype=jnp.bfloat16)
    out_bf16 = jax.block_until_ready(
        ntn_forward_batched(E1, E2, prep_bf16, batch_tile=128))
    assert out_bf16.shape == (B, K)
    assert bool(jnp.allclose(out_bf16, ref_b, atol=5e-2, rtol=5e-2))

    # --- single pair: module-exact XLA path agrees with the kernel -----------
    pair = jax.block_until_ready(
        neural_tensor_layer_single(E1[0:1].T, E2[0:1].T,
                                   weight_matrix, weight_matrix_block, bias))
    assert pair.shape == (K, 1)
    assert bool(jnp.allclose(pair[:, 0], out_f32[0], atol=1e-4, rtol=1e-4))

    print("KERNEL_OK")
</pallas_src>

<mosaic_0001>
module attributes {stable_mosaic.version = 11 : i64} {
  func.func @ntn_kernel(%arg0: i32, %arg1: memref<128x64xf32, #tpu.memory_space<vmem>>, %arg2: memref<128x32xf32, #tpu.memory_space<vmem>>, %arg3: memref<64x640xf32, #tpu.memory_space<vmem>>, %arg4: memref<640x16xf32, #tpu.memory_space<vmem>>, %arg5: memref<1x16xf32, #tpu.memory_space<vmem>>, %arg6: memref<128x16xf32, #tpu.memory_space<vmem>>) attributes {dimension_semantics = [#tpu.dimension_semantics<parallel>], iteration_bounds = array<i64: 4>, scalar_prefetch = 0 : i64, scratch_operands = 0 : i64, tpu.core_type = #tpu.core_type<tc>, window_params = [{transform_indices = @transform_0, window_bounds = array<i64: 128, 64>}, {transform_indices = @transform_1, window_bounds = array<i64: 128, 32>}, {pipeline_mode = #tpu.pipeline_mode<synchronous>, transform_indices = @transform_2, window_bounds = array<i64: 64, 640>}, {pipeline_mode = #tpu.pipeline_mode<synchronous>, transform_indices = @transform_3, window_bounds = array<i64: 640, 16>}, {pipeline_mode = #tpu.pipeline_mode<synchronous>, transform_indices = @transform_4, window_bounds = array<i64: 1, 16>}, {transform_indices = @transform_5, window_bounds = array<i64: 128, 16>}]} {
    %c0 = arith.constant 0 : index
    %c0_0 = arith.constant 0 : index
    %0 = vector.load %arg1[%c0, %c0_0] : memref<128x64xf32, #tpu.memory_space<vmem>>, vector<128x64xf32>
    %c0_1 = arith.constant 0 : index
    %c0_2 = arith.constant 0 : index
    %1 = vector.load %arg3[%c0_1, %c0_2] : memref<64x640xf32, #tpu.memory_space<vmem>>, vector<64x640xf32>
    %cst = arith.constant dense<0.000000e+00> : vector<128x640xf32>
    %2 = tpu.matmul %0, %1, %cst {dimension_numbers = #tpu.dot_dimension_numbers<[1], [0], [0], [1], [0, 0, 1, 1], [], []>} : vector<128x64xf32>, vector<64x640xf32>, vector<128x640xf32> -> vector<128x640xf32>
    %c0_3 = arith.constant 0 : index
    %c0_4 = arith.constant 0 : index
    %3 = vector.load %arg2[%c0_3, %c0_4] : memref<128x32xf32, #tpu.memory_space<vmem>>, vector<128x32xf32>
    %4 = tpu.concatenate %3, %3, %3, %3 in 1 : vector<128x32xf32>, vector<128x32xf32>, vector<128x32xf32>, vector<128x32xf32> -> vector<128x128xf32>
    %5 = tpu.concatenate %4, %4, %4, %4 in 1 : vector<128x128xf32>, vector<128x128xf32>, vector<128x128xf32>, vector<128x128xf32> -> vector<128x512xf32>
    %cst_5 = arith.constant 1.000000e+00 : f32
    %6 = vector.broadcast %cst_5 : f32 to vector<128x128xf32>
    %7 = tpu.concatenate %5, %6 in 1 : vector<128x512xf32>, vector<128x128xf32> -> vector<128x640xf32>
    %8 = arith.mulf %2, %7 : vector<128x640xf32>
    %c0_6 = arith.constant 0 : index
    %c0_7 = arith.constant 0 : index
    %9 = vector.load %arg4[%c0_6, %c0_7] : memref<640x16xf32, #tpu.memory_space<vmem>>, vector<640x16xf32>
    %cst_8 = arith.constant dense<0.000000e+00> : vector<128x16xf32>
    %10 = tpu.matmul %8, %9, %cst_8 {dimension_numbers = #tpu.dot_dimension_numbers<[1], [0], [0], [1], [0, 0, 1, 1], [], []>} : vector<128x640xf32>, vector<640x16xf32>, vector<128x16xf32> -> vector<128x16xf32>
    %c0_9 = arith.constant 0 : index
    %c0_10 = arith.constant 0 : index
    %11 = vector.load %arg5[%c0_9, %c0_10] : memref<1x16xf32, #tpu.memory_space<vmem>>, vector<1x16xf32>
    %12 = vector.broadcast %11 : vector<1x16xf32> to vector<128x16xf32>
    %13 = arith.addf %10, %12 : vector<128x16xf32>
    %cst_11 = arith.constant 0.000000e+00 : f32
    %14 = vector.broadcast %cst_11 : f32 to vector<128x16xf32>
    %15 = arith.maximumf %13, %14 : vector<128x16xf32>
    %c0_12 = arith.constant 0 : index
    %c0_13 = arith.constant 0 : index
    %16 = vector.load %arg6[%c0_12, %c0_13] : memref<128x16xf32, #tpu.memory_space<vmem>>, vector<128x16xf32>
    tpu.vector_store %arg6[%c0_12, %c0_13], %15 {strides = array<i32>} : memref<128x16xf32, #tpu.memory_space<vmem>>, vector<128x16xf32>,
    return
  }
  func.func @transform_0(%arg0: i32) -> (i32, i32) {
    %c0_i32 = arith.constant 0 : i32
    %c0_i32_0 = arith.constant 0 : i32
    return %arg0, %c0_i32 : i32, i32
  }
  func.func @transform_1(%arg0: i32) -> (i32, i32) {
    %c0_i32 = arith.constant 0 : i32
    %c0_i32_0 = arith.constant 0 : i32
    return %arg0, %c0_i32 : i32, i32
  }
  func.func @transform_2(%arg0: i32) -> (i32, i32) {
    %c0_i32 = arith.constant 0 : i32
    %c0_i32_0 = arith.constant 0 : i32
    %c0_i32_1 = arith.constant 0 : i32
    return %c0_i32, %c0_i32_0 : i32, i32
  }
  func.func @transform_3(%arg0: i32) -> (i32, i32) {
    %c0_i32 = arith.constant 0 : i32
    %c0_i32_0 = arith.constant 0 : i32
    %c0_i32_1 = arith.constant 0 : i32
    return %c0_i32, %c0_i32_0 : i32, i32
  }
  func.func @transform_4(%arg0: i32) -> (i32, i32) {
    %c0_i32 = arith.constant 0 : i32
    %c0_i32_0 = arith.constant 0 : i32
    %c0_i32_1 = arith.constant 0 : i32
    return %c0_i32, %c0_i32_0 : i32, i32
  }
  func.func @transform_5(%arg0: i32) -> (i32, i32) {
    %c0_i32 = arith.constant 0 : i32
    %c0_i32_0 = arith.constant 0 : i32
    return %arg0, %c0_i32 : i32, i32
  }
}

</mosaic_0001>

<bundles_post_ra>
// kernel: tpu_custom_call.1
= control target key start
LH: loop header
LB: loop body
LE: loop exit
PB: predicated region body
PF: predicated region fallthrough
CT: control target
= control target key end

     0   :  { %s2163_s18 = smov 0   ;;  %s3215_s0 = inlined_call_operand.vmem [shape: f32[512,64], index: 0, kind: input, shape index: {}]   ;;  %s3216_s1 = inlined_call_operand.vmem [shape: f32[512,32], index: 1, kind: input, shape index: {}]   ;;  %s3217_s2 = inlined_call_operand.vmem [shape: f32[64,640], index: 2, kind: input, shape index: {}]   ;;  %s3218_s3 = inlined_call_operand.vmem [shape: f32[640,16], index: 3, kind: input, shape index: {}]   ;;  %s3219_s4 = inlined_call_operand.vmem [shape: f32[1,16], index: 4, kind: input, shape index: {}]   ;;  %s3220_s5 = inlined_call_operand.vmem [shape: f32[512,16], index: 5, kind: output, shape index: {}]  }
   0x1 LB: > { %s1735_s19 = sadd.s32 4294967295, %s2127_s18   ;;  %p1739_p0 = scmp.ge.s32.totalorder %s2127_s18, 1  ;;  %s2127_s18 = sphi %s2163_s18, %s15_s18  }
   0x2   : > { %p199_p1 = scmp.lt.s32.totalorder %s2127_s18, 5 }
   0x4   : > { %p200_p2 = pnand %p1739_p0, %p199_p1 }
   0x6   : > { %203 = sbr.rel (%p200_p2) target bundleno = 519 (0x207), region = 40 }
   0xb   : > { %v302_v0 = vld [vmem:[%s3217_s2 + $0x120] sm:$0xff]  ;;  %v304_v1 = vld [vmem:[%s3217_s2 + $0x130] sm:$0xff]  ;;  %v301_v2 = vld [vmem:[%s3217_s2 + $0x118] sm:$0xff]  ;;  %s1740_s26 = sshll.u32 %s1735_s19, 4  ;;  %vm306_vm0 = vcmask 523264   ;;  %v2129_v33 = vmov 0.0  }
   0xc   : > { %371 = vmatprep.subr.mxu0 %v302_v0  ;;  %532 = vmatprep.subr.mxu1 %v304_v1  ;;  %v303_v3 = vld [vmem:[%s3217_s2 + $0x128] sm:$0xff]  ;;  %v297_v4 = vld [vmem:[%s3217_s2 + $0xf8] sm:$0xff]  ;;  %p233_p3 = scmp.lt.s32.totalorder %s1740_s26, 63  ;;  %v296_v6 = vld [vmem:[%s3217_s2 + $0xf0] sm:$0xff]  ;;  %s2130_s27 = smov 32   ;;  %vm998_vm1 = vcmask 261120  }
   0xd   : > { %v299_v5 = vld [vmem:[%s3217_s2 + $0x108] sm:$0xff]  ;;  %372 = vmatpush1.msra.mxu0 %v301_v2  ;;  %533 = vmatpush1.msra.mxu1 %v303_v3  ;;  %v298_v7 = vld [vmem:[%s3217_s2 + $0x100] sm:$0xff]  ;;  %v292_v8 = vld [vmem:[%s3217_s2 + $0xd0] sm:$0xff]  ;;  %s2131_s30 = smov 96   ;;  %vm1031_vm2 = vcmask 785408   ;;  %vm1650_vm3 = vcmask 130048  }
   0xe   : > { %373 = vmatprep.subr.mxu0 %v297_v4  ;;  %534 = vmatprep.subr.mxu1 %v299_v5  ;;  %v294_v9 = vld [vmem:[%s3217_s2 + $0xe0] sm:$0xff]  ;;  %v291_v10 = vld [vmem:[%s3217_s2 + $0xc8] sm:$0xff]  ;;  %v293_v11 = vld [vmem:[%s3217_s2 + $0xd8] sm:$0xff]  ;;  %s3228_s26 = smov (!%p233_p3, %s1740_s26), 63 }
   0xf   : > { %374 = vmatpush1.msra.mxu0 %v296_v6  ;;  %535 = vmatpush1.msra.mxu1 %v298_v7  ;;  %v287_v12 = vld [vmem:[%s3217_s2 + $0xa8] sm:$0xff]  ;;  %v289_v13 = vld [vmem:[%s3217_s2 + $0xb8] sm:$0xff]  ;;  %v286_v14 = vld [vmem:[%s3217_s2 + $0xa0] sm:$0xff]  ;;  %s2244_s22 = sshll.u32 %s3228_s26, 3  ;;  %s2132_s26 = smov 64  }
  0x10   : > { %375 = vmatprep.subr.mxu0 %v292_v8  ;;  %536 = vmatprep.subr.mxu1 %v294_v9  ;;  %v288_v15 = vld [vmem:[%s3217_s2 + $0xb0] sm:$0xff]  ;;  %v282_v16 = vld [vmem:[%s3217_s2 + $0x80] sm:$0xff]  ;;  %v281_v18 = vld [vmem:[%s3217_s2 + $0x78] sm:$0xff]  ;;  %s2268_s12 = scalar_lea.vmem %s3215_s0, %s2244_s22  ;;  %s2283_s20 = scalar_lea.vmem %s3216_s1, %s2244_s22 }
  0x11   : > { %376 = vmatpush1.msra.mxu0 %v291_v10  ;;  %537 = vmatpush1.msra.mxu1 %v293_v11  ;;  %v284_v17 = vld [vmem:[%s3217_s2 + $0x90] sm:$0xff]  ;;  %v283_v19 = vld [vmem:[%s3217_s2 + $0x88] sm:$0xff]  ;;  %v277_v20 = vld [vmem:[%s3217_s2 + $0x58] sm:$0xff] }
  0x12   : > { %377 = vmatprep.subr.mxu0 %v287_v12  ;;  %538 = vmatprep.subr.mxu1 %v289_v13  ;;  %v279_v21 = vld [vmem:[%s3217_s2 + $0x68] sm:$0xff]  ;;  %v276_v22 = vld [vmem:[%s3217_s2 + $0x50] sm:$0xff]  ;;  %v278_v23 = vld [vmem:[%s3217_s2 + $0x60] sm:$0xff] }
  0x13   : > { %378 = vmatpush1.msra.mxu0 %v286_v14  ;;  %539 = vmatpush1.msra.mxu1 %v288_v15  ;;  %v272_v24 = vld [vmem:[%s3217_s2 + $0x30] sm:$0xff]  ;;  %v274_v25 = vld [vmem:[%s3217_s2 + $0x40] sm:$0xff]  ;;  %v271_v26 = vld [vmem:[%s3217_s2 + $0x28] sm:$0xff] }
  0x14   : > { %379 = vmatprep.subr.mxu0 %v282_v16  ;;  %540 = vmatprep.subr.mxu1 %v284_v17  ;;  %v273_v27 = vld [vmem:[%s3217_s2 + $0x38] sm:$0xff]  ;;  %v267_v28 = vld [vmem:[%s3217_s2 + $0x8] sm:$0xff]  ;;  %v266_v30 = vld [vmem:[%s3217_s2] sm:$0xff] }
  0x15   : > { %380 = vmatpush1.msra.mxu0 %v281_v18  ;;  %541 = vmatpush1.msra.mxu1 %v283_v19  ;;  %v269_v29 = vld [vmem:[%s3217_s2 + $0x18] sm:$0xff]  ;;  %v268_v31 = vld [vmem:[%s3217_s2 + $0x10] sm:$0xff]  ;;  %v2277_v32 = vld [vmem:[%s2268_s12] sm:$0xff] }
  0x16   : > { %381 = vmatprep.subr.mxu0 %v277_v20  ;;  %542 = vmatprep.subr.mxu1 %v279_v21  ;;  %v305_v34 = vld [vmem:[%s3217_s2 + $0x138] sm:$0xff]  ;;  %v300_v35 = vld [vmem:[%s3217_s2 + $0x110] sm:$0xff]  ;;  %v2298_v36 = vld [vmem:[%s2283_s20] sm:$0xff] }
  0x17   : > { %382 = vmatpush1.msra.mxu0 %v276_v22  ;;  %543 = vmatpush1.msra.mxu1 %v278_v23  ;;  %v2302_v37 = vld [vmem:[%s2268_s12 + $0x8] sm:$0xff]  ;;  %v2317_v39 = vld [vmem:[%s2268_s12 + $0x10] sm:$0xff]  ;;  %v290_v41 = vld [vmem:[%s3217_s2 + $0xc0] sm:$0xff] }
  0x18   : > { %383 = vmatprep.subr.mxu0 %v272_v24  ;;  %544 = vmatprep.subr.mxu1 %v274_v25  ;;  %v295_v38 = vld [vmem:[%s3217_s2 + $0xe8] sm:$0xff]  ;;  %v2336_v42 = vld [vmem:[%s2268_s12 + $0x18] sm:$0xff]  ;;  %v2350_v44 = vld [vmem:[%s2283_s20 + $0x10] sm:$0xff] }
  0x19   : > { %384 = vmatpush1.msra.mxu0 %v271_v26  ;;  %545 = vmatpush1.msra.mxu1 %v273_v27  ;;  %v2324_v40 = vld [vmem:[%s2283_s20 + $0x8] sm:$0xff]  ;;  %v285_v43 = vld [vmem:[%s3217_s2 + $0x98] sm:$0xff]  ;;  %v2355_v45 = vld [vmem:[%s2268_s12 + $0x20] sm:$0xff] }
  0x1a   : > { %385 = vmatprep.subr.mxu0 %v267_v28  ;;  %546 = vmatprep.subr.mxu1 %v269_v29  ;;  %v280_v46 = vld [vmem:[%s3217_s2 + $0x70] sm:$0xff]  ;;  %v2371_v47 = vld [vmem:[%s2268_s12 + $0x28] sm:$0xff]  ;;  %v2378_v48 = vld [vmem:[%s2283_s20 + $0x18] sm:$0xff] }
  0x1b   : > { %386 = vmatpush1.msra.mxu0 %v266_v30  ;;  %419 = vmatprep.mubr.f32.mxu0 %v2129_v33  ;;  %v275_v49 = vld [vmem:[%s3217_s2 + $0x48] sm:$0xff]  ;;  %v2390_v50 = vld [vmem:[%s2268_s12 + $0x30] sm:$0xff]  ;;  %v270_v51 = vld [vmem:[%s3217_s2 + $0x20] sm:$0xff] }
  0x1c   : > { %547 = vmatpush1.msra.mxu1 %v268_v31  ;;  %580 = vmatprep.mubr.f32.mxu1 %v2129_v33  ;;  %v2404_v52 = vld [vmem:[%s2283_s20 + $0x20] sm:$0xff]  ;;  %v2409_v53 = vld [vmem:[%s2268_s12 + $0x38] sm:$0xff]  ;;  %v2432_v56 = vld [vmem:[%s2283_s20 + $0x28] sm:$0xff] }
  0x1d   : > { %1746 = vmatmul.mubr.msk.f32.vlgmr.msra.gmra.mxu0 %vm306_vm0, %v2277_v32  ;;  %1762 = vmatmul.mubr.msk.f32.vlgmr.msra.gmra.mxu1 %vm306_vm0, %v2277_v32  ;;  %v1143_v54 = vld [vmem:[%s3218_s3 + $0xf8] sm:$0xff]  ;;  %v2425_v55 = vld [vmem:[%s2268_s12 + $0x40] sm:$0xff]  ;;  %v1142_v58 = vld [vmem:[%s3218_s3 + $0xf0] sm:$0xff] }
  0x1e   : > { %2013 = vmatprep.subr.mxu0 %v305_v34  ;;  %425 = vmatprep.mubr.f32.mxu0 %v2129_v33  ;;  %v1127_v57 = vld [vmem:[%s3218_s3 + $0x78] sm:$0xff]  ;;  %v2447_v59 = vld [vmem:[%s2268_s12 + $0x48] sm:$0xff]  ;;  %v1126_v60 = vld [vmem:[%s3218_s3 + $0x70] sm:$0xff] }
  0x1f   : > { %2014 = vmatpush3.msra.mxu0 %v305_v34  ;;  %586 = vmatprep.mubr.f32.mxu1 %v2129_v33  ;;  %v2461_v61 = vld [vmem:[%s2283_s20 + $0x30] sm:$0xff]  ;;  %v1141_v62 = vld [vmem:[%s3218_s3 + $0xe8] sm:$0xff]  ;;  %v1140_v1 = vld [vmem:[%s3218_s3 + $0xe0] sm:$0xff] }
  0x20   : > { %2015 = vmatprep.subr.mxu0 %v300_v35  ;;  %854 = vrot.lane.b32.xlu0 %v2298_v36, %s2130_s27  ;;  %v2469_v63 = vld [vmem:[%s2268_s12 + $0x50] sm:$0xff]  ;;  %v1125_v0 = vld [vmem:[%s3218_s3 + $0x68] sm:$0xff]  ;;  %v2488_v2 = vld [vmem:[%s2268_s12 + $0x58] sm:$0xff] }
  0x21   : > { %1747 = vmatmul.mubr.msk.f32.gmra.mxu0 %vm306_vm0, %v2302_v37  ;;  %1763 = vmatmul.mubr.msk.f32.gmra.mxu1 %vm306_vm0, %v2302_v37  ;;  %v2495_v3 = vld [vmem:[%s2283_s20 + $0x38] sm:$0xff]  ;;  %v1124_v4 = vld [vmem:[%s3218_s3 + $0x60] sm:$0xff]  ;;  %v1138_v9 = vld [vmem:[%s3218_s3 + $0xd0] sm:$0xff] }
  0x22   : > { %431 = vmatprep.mubr.f32.mxu0 %v2129_v33  ;;  %592 = vmatprep.mubr.f32.mxu1 %v2129_v33  ;;  %v1139_v5 = vld [vmem:[%s3218_s3 + $0xd8] sm:$0xff]  ;;  %v2510_v6 = vld [vmem:[%s2268_s12 + $0x60] sm:$0xff]  ;;  %v2532_v10 = vld [vmem:[%s2268_s12 + $0x68] sm:$0xff] }
  0x23   : > { %2016 = vmatpush3.msra.mxu0 %v300_v35  ;;  %950 = vrot.lane.b32.xlu1 %v2298_v36, %s2131_s30  ;;  %v1123_v7 = vld [vmem:[%s3218_s3 + $0x58] sm:$0xff]  ;;  %v2524_v8 = vld [vmem:[%s2283_s20 + $0x40] sm:$0xff]  ;;  %v1122_v11 = vld [vmem:[%s3218_s3 + $0x50] sm:$0xff] }
  0x24   : > { %2017 = vmatprep.subr.mxu0 %v295_v38  ;;  %902 = vrot.lane.b32.xlu0 %v2298_v36, %s2132_s26  ;;  %v1137_v12 = vld [vmem:[%s3218_s3 + $0xc8] sm:$0xff]  ;;  %v2551_v13 = vld [vmem:[%s2268_s12 + $0x70] sm:$0xff]  ;;  %v1136_v16 = vld [vmem:[%s3218_s3 + $0xc0] sm:$0xff] }
  0x25   : > { %1748 = vmatmul.mubr.msk.f32.gmra.mxu0 %vm306_vm0, %v2317_v39  ;;  %1764 = vmatmul.mubr.msk.f32.gmra.mxu1 %vm306_vm0, %v2317_v39  ;;  %v2558_v14 = vld [vmem:[%s2283_s20 + $0x48] sm:$0xff]  ;;  %v2573_v17 = vld [vmem:[%s2268_s12 + $0x78] sm:$0xff]  ;;  %v1120_v18 = vld [vmem:[%s3218_s3 + $0x40] sm:$0xff] }
  0x26   : > { %437 = vmatprep.mubr.f32.mxu0 %v2129_v33  ;;  %598 = vmatprep.mubr.f32.mxu1 %v2129_v33  ;;  %v1121_v15 = vld [vmem:[%s3218_s3 + $0x48] sm:$0xff]  ;;  %v1135_v19 = vld [vmem:[%s3218_s3 + $0xb8] sm:$0xff]  ;;  %v2590_v20 = vld [vmem:[%s2283_s20 + $0x50] sm:$0xff] }
  0x27   : > { %2018 = vmatpush3.msra.mxu0 %v295_v38  ;;  %856 = vrot.lane.b32.xlu1 %v2324_v40, %s2130_s27  ;;  %v1119_v21 = vld [vmem:[%s3218_s3 + $0x38] sm:$0xff]  ;;  %v1174_v24 = vld [vmem:[%s3218_s3 + $0x1f0] sm:$0xff]  ;;  %v1173_v29 = vld [vmem:[%s3218_s3 + $0x1e8] sm:$0xff] }
  0x28   : > { %2019 = vmatprep.subr.mxu0 %v290_v41  ;;  %904 = vrot.lane.b32.xlu0 %v2324_v40, %s2132_s26  ;;  %v1175_v22 = vld [vmem:[%s3218_s3 + $0x1f8] sm:$0xff]  ;;  %v1134_v25 = vld [vmem:[%s3218_s3 + $0xb0] sm:$0xff]  ;;  %v1157_v30 = vld [vmem:[%s3218_s3 + $0x168] sm:$0xff] }
  0x29   : > { %1749 = vmatmul.mubr.msk.f32.gmra.mxu0 %vm306_vm0, %v2336_v42  ;;  %1765 = vmatmul.mubr.msk.f32.gmra.mxu1 %vm306_vm0, %v2336_v42  ;;  %v1159_v23 = vld [vmem:[%s3218_s3 + $0x178] sm:$0xff]  ;;  %v1118_v26 = vld [vmem:[%s3218_s3 + $0x30] sm:$0xff]  ;;  %v1172_v31 = vld [vmem:[%s3218_s3 + $0x1e0] sm:$0xff] }
  0x2a   : > { %443 = vmatprep.mubr.f32.mxu0 %v2129_v33  ;;  %604 = vmatprep.mubr.f32.mxu1 %v2129_v33  ;;  %v1158_v27 = vld [vmem:[%s3218_s3 + $0x170] sm:$0xff]  ;;  %v2628_v28 = vld [vmem:[%s2283_s20 + $0x58] sm:$0xff]  ;;  %v2656_v34 = vld [vmem:[%s2283_s20 + $0x60] sm:$0xff] }
  0x2b   : > { %2020 = vmatpush3.msra.mxu0 %v290_v41  ;;  %952 = vrot.lane.b32.xlu1 %v2324_v40, %s2131_s30  ;;  %v1117_v35 = vld [vmem:[%s3218_s3 + $0x28] sm:$0xff]  ;;  %v1155_v38 = vld [vmem:[%s3218_s3 + $0x158] sm:$0xff]  ;;  %v1132_v41 = vld [vmem:[%s3218_s3 + $0xa0] sm:$0xff] }
  0x2c   : > { %2021 = vmatprep.subr.mxu0 %v285_v43  ;;  %858 = vrot.lane.b32.xlu0 %v2350_v44, %s2130_s27 }
  0x2d   : > { %1750 = vmatmul.mubr.msk.f32.gmra.mxu0 %vm306_vm0, %v2355_v45  ;;  %1766 = vmatmul.mubr.msk.f32.gmra.mxu1 %vm306_vm0, %v2355_v45 }
  0x2e   : > { %449 = vmatprep.mubr.f32.mxu0 %v2129_v33  ;;  %610 = vmatprep.mubr.f32.mxu1 %v2129_v33 }
  0x2f   : > { %2022 = vmatpush3.msra.mxu0 %v285_v43  ;;  %906 = vrot.lane.b32.xlu1 %v2350_v44, %s2132_s26  ;;  %v1154_v43 = vld [vmem:[%s3218_s3 + $0x150] sm:$0xff] }
  0x30   : > { %2023 = vmatprep.subr.mxu0 %v280_v46  ;;  %954 = vrot.lane.b32.xlu0 %v2350_v44, %s2131_s30 }
  0x31   : > { %1751 = vmatmul.mubr.msk.f32.gmra.mxu0 %vm306_vm0, %v2371_v47  ;;  %1767 = vmatmul.mubr.msk.f32.gmra.mxu1 %vm306_vm0, %v2371_v47 }
  0x32   : > { %455 = vmatprep.mubr.f32.mxu0 %v2129_v33  ;;  %616 = vmatprep.mubr.f32.mxu1 %v2129_v33 }
  0x33   : > { %2024 = vmatpush3.msra.mxu0 %v280_v46  ;;  %860 = vrot.lane.b32.xlu1 %v2378_v48, %s2130_s27  ;;  %v1169_v46 = vld [vmem:[%s3218_s3 + $0x1c8] sm:$0xff] }
  0x34   : > { %2025 = vmatprep.subr.mxu0 %v275_v49  ;;  %908 = vrot.lane.b32.xlu0 %v2378_v48, %s2132_s26 }
  0x35   : > { %1752 = vmatmul.mubr.msk.f32.gmra.mxu0 %vm306_vm0, %v2390_v50  ;;  %1768 = vmatmul.mubr.msk.f32.gmra.mxu1 %vm306_vm0, %v2390_v50 }
  0x36   : > { %461 = vmatprep.mubr.f32.mxu0 %v2129_v33  ;;  %622 = vmatprep.mubr.f32.mxu1 %v2129_v33 }
  0x37   : > { %2026 = vmatpush3.msra.mxu0 %v275_v49  ;;  %956 = vrot.lane.b32.xlu1 %v2378_v48, %s2131_s30  ;;  %v1168_v49 = vld [vmem:[%s3218_s3 + $0x1c0] sm:$0xff] }
  0x38   : > { %2027 = vmatprep.subr.mxu0 %v270_v51  ;;  %862 = vrot.lane.b32.xlu0 %v2404_v52, %s2130_s27 }
  0x39   : > { %1753 = vmatmul.mubr.msk.f32.gmra.mxu0 %vm306_vm0, %v2409_v53  ;;  %1769 = vmatmul.mubr.msk.f32.gmra.mxu1 %vm306_vm0, %v2409_v53 }
  0x3a   : > { %467 = vmatprep.mubr.f32.mxu0 %v2129_v33  ;;  %628 = vmatprep.mubr.f32.mxu1 %v2129_v33 }
  0x3b   : > { %2028 = vmatpush3.msra.mxu0 %v270_v51  ;;  %910 = vrot.lane.b32.xlu1 %v2404_v52, %s2132_s26  ;;  %v1152_v51 = vld [vmem:[%s3218_s3 + $0x140] sm:$0xff] }
  0x3c   : > { %958 = vrot.lane.b32.xlu0 %v2404_v52, %s2131_s30  ;;  %1821 = vmatprep.subr.mxu1 %v1143_v54  ;;  %v1115_v54 = vld [vmem:[%s3218_s3 + $0x18] sm:$0xff] }
  0x3d   : > { %1754 = vmatmul.mubr.msk.f32.gmra.mxu0 %vm306_vm0, %v2425_v55  ;;  %1770 = vmatmul.mubr.msk.f32.gmra.mxu1 %vm306_vm0, %v2425_v55 }
  0x3e   : > { %473 = vmatprep.mubr.f32.mxu0 %v2129_v33  ;;  %634 = vmatprep.mubr.f32.mxu1 %v2129_v33 }
  0x3f   : > { %864 = vrot.lane.b32.xlu1 %v2432_v56, %s2130_s27  ;;  %1822 = vmatpush3.msra.mxu1 %v1127_v57  ;;  %v1151_v57 = vld [vmem:[%s3218_s3 + $0x138] sm:$0xff] }
  0x40   : > { %912 = vrot.lane.b32.xlu0 %v2432_v56, %s2132_s26  ;;  %1823 = vmatprep.subr.mxu1 %v1142_v58  ;;  %v1166_v58 = vld [vmem:[%s3218_s3 + $0x1b0] sm:$0xff] }
  0x41   : > { %1755 = vmatmul.mubr.msk.f32.gmra.mxu0 %vm306_vm0, %v2447_v59  ;;  %1771 = vmatmul.mubr.msk.f32.gmra.mxu1 %vm306_vm0, %v2447_v59 }
  0x42   : > { %479 = vmatprep.mubr.f32.mxu0 %v2129_v33  ;;  %640 = vmatprep.mubr.f32.mxu1 %v2129_v33 }
  0x43   : > { %960 = vrot.lane.b32.xlu1 %v2432_v56, %s2131_s30  ;;  %1824 = vmatpush3.msra.mxu1 %v1126_v60  ;;  %v1114_v60 = vld [vmem:[%s3218_s3 + $0x10] sm:$0xff] }
  0x44   : > { %866 = vrot.lane.b32.xlu0 %v2461_v61, %s2130_s27  ;;  %1825 = vmatprep.subr.mxu1 %v1141_v62  ;;  %v1150_v62 = vld [vmem:[%s3218_s3 + $0x130] sm:$0xff] }
  0x45   : > { %1756 = vmatmul.mubr.msk.f32.gmra.mxu0 %vm306_vm0, %v2469_v63  ;;  %1772 = vmatmul.mubr.msk.f32.gmra.mxu1 %vm306_vm0, %v2469_v63 }
  0x46   : > { %485 = vmatprep.mubr.f32.mxu0 %v2129_v33  ;;  %646 = vmatprep.mubr.f32.mxu1 %v2129_v33 }
  0x47   : > { %914 = vrot.lane.b32.xlu1 %v2461_v61, %s2132_s26  ;;  %1826 = vmatpush3.msra.mxu1 %v1125_v0  ;;  %v2763_v0 = vld [vmem:[%s2283_s20 + $0x78] sm:$0xff] }
  0x48   : > { %962 = vrot.lane.b32.xlu0 %v2461_v61, %s2131_s30  ;;  %1827 = vmatprep.subr.mxu1 %v1140_v1  ;;  %v1165_v1 = vld [vmem:[%s3218_s3 + $0x1a8] sm:$0xff] }
  0x49   : > { %1757 = vmatmul.mubr.msk.f32.gmra.mxu0 %vm306_vm0, %v2488_v2  ;;  %1773 = vmatmul.mubr.msk.f32.gmra.mxu1 %vm306_vm0, %v2488_v2 }
  0x4a   : > { %491 = vmatprep.mubr.f32.mxu0 %v2129_v33  ;;  %652 = vmatprep.mubr.f32.mxu1 %v2129_v33 }
  0x4b   : > { %868 = vrot.lane.b32.xlu1 %v2495_v3, %s2130_s27  ;;  %1828 = vmatpush3.msra.mxu1 %v1124_v4  ;;  %v1164_v4 = vld [vmem:[%s3218_s3 + $0x1a0] sm:$0xff] }
  0x4c   : > { %916 = vrot.lane.b32.xlu0 %v2495_v3, %s2132_s26  ;;  %1829 = vmatprep.subr.mxu1 %v1139_v5  ;;  %v1113_v5 = vld [vmem:[%s3218_s3 + $0x8] sm:$0xff] }
  0x4d   : > { %1758 = vmatmul.mubr.msk.f32.gmra.mxu0 %vm306_vm0, %v2510_v6  ;;  %1774 = vmatmul.mubr.msk.f32.gmra.mxu1 %vm306_vm0, %v2510_v6 }
  0x4e   : > { %497 = vmatprep.mubr.f32.mxu0 %v2129_v33  ;;  %658 = vmatprep.mubr.f32.mxu1 %v2129_v33 }
  0x4f   : > { %964 = vrot.lane.b32.xlu1 %v2495_v3, %s2131_s30  ;;  %1830 = vmatpush3.msra.mxu1 %v1123_v7  ;;  %v1128_v7 = vld [vmem:[%s3218_s3 + $0x80] sm:$0xff] }
  0x50   : > { %870 = vrot.lane.b32.xlu0 %v2524_v8, %s2130_s27  ;;  %1831 = vmatprep.subr.mxu1 %v1138_v9  ;;  %v1163_v9 = vld [vmem:[%s3218_s3 + $0x198] sm:$0xff] }
  0x51   : > { %1759 = vmatmul.mubr.msk.f32.gmra.mxu0 %vm306_vm0, %v2532_v10  ;;  %1775 = vmatmul.mubr.msk.f32.gmra.mxu1 %vm306_vm0, %v2532_v10 }
  0x52   : > { %503 = vmatprep.mubr.f32.mxu0 %v2129_v33  ;;  %664 = vmatprep.mubr.f32.mxu1 %v2129_v33 }
  0x53   : > { %918 = vrot.lane.b32.xlu1 %v2524_v8, %s2132_s26  ;;  %1832 = vmatpush3.msra.mxu1 %v1122_v11  ;;  %v1112_v11 = vld [vmem:[%s3218_s3] sm:$0xff] }
  0x54   : > { %966 = vrot.lane.b32.xlu0 %v2524_v8, %s2131_s30  ;;  %1833 = vmatprep.subr.mxu1 %v1137_v12  ;;  %v1162_v12 = vld [vmem:[%s3218_s3 + $0x190] sm:$0xff] }
  0x55   : > { %1760 = vmatmul.mubr.msk.f32.gmra.mxu0 %vm306_vm0, %v2551_v13  ;;  %1776 = vmatmul.mubr.msk.f32.gmra.mxu1 %vm306_vm0, %v2551_v13 }
  0x56   : > { %509 = vmatprep.mubr.f32.mxu0 %v2129_v33  ;;  %670 = vmatprep.mubr.f32.mxu1 %v2129_v33  ;;  %v1156_v33 = vld [vmem:[%s3218_s3 + $0x160] sm:$0xff] }
  0x57   : > { %872 = vrot.lane.b32.xlu1 %v2558_v14, %s2130_s27  ;;  %1834 = vmatpush3.msra.mxu1 %v1121_v15  ;;  %v1146_v15 = vld [vmem:[%s3218_s3 + $0x110] sm:$0xff] }
  0x58   : > { %920 = vrot.lane.b32.xlu0 %v2558_v14, %s2132_s26  ;;  %1835 = vmatprep.subr.mxu1 %v1136_v16  ;;  %v1161_v16 = vld [vmem:[%s3218_s3 + $0x188] sm:$0xff] }
  0x59   : > { %1761 = vmatmul.mubr.msk.f32.gmra.mxu0 %vm306_vm0, %v2573_v17  ;;  %1777 = vmatmul.mubr.msk.f32.gmra.mxu1 %vm306_vm0, %v2573_v17 }
  0x5a   : > { %2029 = vmatprep.mubr.msk.f32.mxu0 %vm306_vm0, %v2277_v32  ;;  %1836 = vmatpush3.msra.mxu1 %v1120_v18  ;;  %v1133_v32 = vld [vmem:[%s3218_s3 + $0xa8] sm:$0xff]  ;;  %v1160_v18 = vld [vmem:[%s3218_s3 + $0x180] sm:$0xff] }
  0x5b   : > { %968 = vrot.lane.b32.xlu1 %v2558_v14, %s2131_s30  ;;  %1837 = vmatprep.subr.mxu1 %v1135_v19  ;;  %v1144_v19 = vld [vmem:[%s3218_s3 + $0x100] sm:$0xff] }
  0x5c   : > { %874 = vrot.lane.b32.xlu0 %v2590_v20, %s2130_s27  ;;  %1838 = vmatpush3.msra.mxu1 %v1119_v21 }
  0x5d   : > { %2030 = vmatmul.mubr.msk.f32.vlgmr.msra.gmra.mxu0 %vm306_vm0, %v2302_v37  ;;  %1901 = vmatprep.subr.mxu0 %v1175_v22  ;;  %v1171_v37 = vld [vmem:[%s3218_s3 + $0x1d8] sm:$0xff] }
  0x5e   : > { %2032 = vmatprep.mubr.msk.f32.mxu0 %vm306_vm0, %v2317_v39  ;;  %1902 = vmatpush3.msra.mxu0 %v1159_v23  ;;  %v1170_v39 = vld [vmem:[%s3218_s3 + $0x1d0] sm:$0xff] }
  0x5f   : > { %922 = vrot.lane.b32.xlu1 %v2590_v20, %s2132_s26  ;;  %1903 = vmatprep.subr.mxu0 %v1174_v24 }
  0x60   : > { %970 = vrot.lane.b32.xlu0 %v2590_v20, %s2131_s30  ;;  %1839 = vmatprep.subr.mxu1 %v1134_v25 }
  0x61   : > { %2033 = vmatmul.mubr.msk.f32.gmra.mxu0 %vm306_vm0, %v2336_v42  ;;  %1840 = vmatpush3.msra.mxu1 %v1118_v26  ;;  %v1116_v42 = vld [vmem:[%s3218_s3 + $0x20] sm:$0xff] }
  0x62   : > { %2035 = vmatprep.mubr.msk.f32.mxu0 %vm306_vm0, %v2355_v45  ;;  %1904 = vmatpush3.msra.mxu0 %v1158_v27  ;;  %v2694_v45 = vld [vmem:[%s2283_s20 + $0x68] sm:$0xff] }
  0x63   : > { %876 = vrot.lane.b32.xlu1 %v2628_v28, %s2130_s27  ;;  %1905 = vmatprep.subr.mxu0 %v1173_v29 }
  0x64   : > { %924 = vrot.lane.b32.xlu0 %v2628_v28, %s2132_s26  ;;  %1906 = vmatpush3.msra.mxu0 %v1157_v30 }
  0x65   : > { %2036 = vmatmul.mubr.msk.f32.gmra.mxu0 %vm306_vm0, %v2371_v47  ;;  %1907 = vmatprep.subr.mxu0 %v1172_v31  ;;  %v1153_v47 = vld [vmem:[%s3218_s3 + $0x148] sm:$0xff] }
  0x66   : > { %2038 = vmatprep.mubr.msk.f32.mxu0 %vm306_vm0, %v2390_v50  ;;  %1841 = vmatprep.subr.mxu1 %v1133_v32  ;;  %v1131_v50 = vld [vmem:[%s3218_s3 + $0x98] sm:$0xff] }
  0x67   : > { %972 = vrot.lane.b32.xlu1 %v2628_v28, %s2131_s30  ;;  %1908 = vmatpush3.msra.mxu0 %v1156_v33 }
  0x68   : > { %878 = vrot.lane.b32.xlu0 %v2656_v34, %s2130_s27  ;;  %1842 = vmatpush3.msra.mxu1 %v1117_v35 }
  0x69   : > { %2039 = vmatmul.mubr.msk.f32.gmra.mxu0 %vm306_vm0, %v2409_v53  ;;  %1909 = vmatprep.subr.mxu0 %v1171_v37  ;;  %v2722_v53 = vld [vmem:[%s2283_s20 + $0x70] sm:$0xff] }
  0x6a   : > { %2041 = vmatprep.mubr.msk.f32.mxu0 %vm306_vm0, %v2425_v55  ;;  %1910 = vmatpush3.msra.mxu0 %v1155_v38  ;;  %v1167_v55 = vld [vmem:[%s3218_s3 + $0x1b8] sm:$0xff] }
  0x6b   : > { %926 = vrot.lane.b32.xlu1 %v2656_v34, %s2132_s26  ;;  %1911 = vmatprep.subr.mxu0 %v1170_v39 }
  0x6c   : > { %974 = vrot.lane.b32.xlu0 %v2656_v34, %s2131_s30  ;;  %1843 = vmatprep.subr.mxu1 %v1132_v41 }
  0x6d   : > { %2042 = vmatmul.mubr.msk.f32.gmra.mxu0 %vm306_vm0, %v2447_v59  ;;  %1844 = vmatpush3.msra.mxu1 %v1116_v42  ;;  %v1130_v59 = vld [vmem:[%s3218_s3 + $0x90] sm:$0xff] }
  0x6e   : > { %2044 = vmatprep.mubr.msk.f32.mxu0 %vm306_vm0, %v2469_v63  ;;  %1912 = vmatpush3.msra.mxu0 %v1154_v43  ;;  %v1129_v63 = vld [vmem:[%s3218_s3 + $0x88] sm:$0xff] }
  0x6f   : > { %880 = vrot.lane.b32.xlu1 %v2694_v45, %s2130_s27  ;;  %1913 = vmatprep.subr.mxu0 %v1169_v46 }
  0x70   : > { %928 = vrot.lane.b32.xlu0 %v2694_v45, %s2132_s26  ;;  %1914 = vmatpush3.msra.mxu0 %v1153_v47 }
  0x71   : > { %2045 = vmatmul.mubr.msk.f32.gmra.mxu0 %vm306_vm0, %v2488_v2  ;;  %1915 = vmatprep.subr.mxu0 %v1168_v49  ;;  %v1149_v2 = vld [vmem:[%s3218_s3 + $0x128] sm:$0xff] }
  0x72   : > { %2047 = vmatprep.mubr.msk.f32.mxu0 %vm306_vm0, %v2510_v6  ;;  %1845 = vmatprep.subr.mxu1 %v1131_v50  ;;  %v1148_v6 = vld [vmem:[%s3218_s3 + $0x120] sm:$0xff] }
  0x73   : > { %976 = vrot.lane.b32.xlu1 %v2694_v45, %s2131_s30  ;;  %1916 = vmatpush3.msra.mxu0 %v1152_v51 }
  0x74   : > { %882 = vrot.lane.b32.xlu0 %v2722_v53, %s2130_s27  ;;  %1846 = vmatpush3.msra.mxu1 %v1115_v54 }
  0x75   : > { %2048 = vmatmul.mubr.msk.f32.gmra.mxu0 %vm306_vm0, %v2532_v10  ;;  %1917 = vmatprep.subr.mxu0 %v1167_v55  ;;  %v1147_v10 = vld [vmem:[%s3218_s3 + $0x118] sm:$0xff] }
  0x76   : > { %2050 = vmatprep.mubr.msk.f32.mxu0 %vm306_vm0, %v2551_v13  ;;  %1918 = vmatpush3.msra.mxu0 %v1151_v57  ;;  %v2804_v13 = vld [vmem:[%s3218_s3 + $0x278] sm:$0xff] }
  0x77   : > { %930 = vrot.lane.b32.xlu1 %v2722_v53, %s2132_s26  ;;  %1919 = vmatprep.subr.mxu0 %v1166_v58 }
  0x78   : > { %978 = vrot.lane.b32.xlu0 %v2722_v53, %s2131_s30  ;;  %1847 = vmatprep.subr.mxu1 %v1130_v59 }
  0x79   : > { %2051 = vmatmul.mubr.msk.f32.gmra.mxu0 %vm306_vm0, %v2573_v17  ;;  %1848 = vmatpush3.msra.mxu1 %v1114_v60  ;;  %v1145_v17 = vld [vmem:[%s3218_s3 + $0x108] sm:$0xff] }
  0x7a   : > { %1920 = vmatpush3.msra.mxu0 %v1150_v62  ;;  %1849 = vmatprep.subr.mxu1 %v1129_v63 }
  0x7b   : > { %884 = vrot.lane.b32.xlu1 %v2763_v0, %s2130_s27  ;;  %1921 = vmatprep.subr.mxu0 %v1165_v1 }
  0x7c   : > { %932 = vrot.lane.b32.xlu0 %v2763_v0, %s2132_s26  ;;  %1922 = vmatpush3.msra.mxu0 %v1149_v2  ;;  %s3129_s26 = scalar_lea.vmem %s3220_s5, %s2244_s22 }
  0x7d   : > { %1923 = vmatprep.subr.mxu0 %v1164_v4  ;;  %1850 = vmatpush3.msra.mxu1 %v1113_v5 }
  0x7e   : > { %1924 = vmatpush3.msra.mxu0 %v1148_v6  ;;  %1851 = vmatprep.subr.mxu1 %v1128_v7 }
  0x7f   : > { %980 = vrot.lane.b32.xlu1 %v2763_v0, %s2131_s30  ;;  %1925 = vmatprep.subr.mxu0 %v1163_v9 }
  0x80   : > { %1926 = vmatpush3.msra.mxu0 %v1147_v10  ;;  %1852 = vmatpush3.msra.mxu1 %v1112_v11 }
  0x81   : > { %1927 = vmatprep.subr.mxu0 %v1162_v12  ;;  %2053 = vmatprep.subr.mxu1 %v2804_v13 }
  0x82   : > { %1928 = vmatpush3.msra.mxu0 %v1146_v15 }
  0x83   : > { %1929 = vmatprep.subr.mxu0 %v1161_v16 }
  0x84   : > { %1930 = vmatpush3.msra.mxu0 %v1145_v17  ;;  %v1190_v17 = vld [vmem:[%s3218_s3 + $0x270] sm:$0xff] }
  0x85   : > { %1931 = vmatprep.subr.mxu0 %v1160_v18 }
  0x86   : > { %1932 = vmatpush3.msra.mxu0 %v1144_v19 }
  0x92   : > { %v855_v21 = vpop.permute.xlu0 %854 }
  0x93   : > { %v999_v58 = vsel %vm998_vm1, %v2298_v36, %v855_v21 }
  0x95   : > { %v951_v22 = vpop.permute.xlu1 %950 }
  0x96   : > { %v903_v23 = vpop.permute.xlu0 %902 }
  0x97   : > { %v1015_v60 = vsel %vm306_vm0, %v999_v58, %v903_v23 }
  0x98   : > { %v1032_v4 = vsel %vm1031_vm2, %v1015_v60, %v951_v22 }
  0x99   : > { %v857_v24 = vpop.permute.xlu1 %856 }
  0x9a   : > { %v905_v25 = vpop.permute.xlu0 %904  ;;  %v1000_v62 = vsel %vm998_vm1, %v2324_v40, %v857_v24 }
  0x9b   : > { %v1016_v7 = vsel %vm306_vm0, %v1000_v62, %v905_v25 }
  0x9d   : > { %v953_v26 = vpop.permute.xlu1 %952 }
  0x9e   : > { %v859_v27 = vpop.permute.xlu0 %858  ;;  %v1033_v18 = vsel %vm1031_vm2, %v1016_v7, %v953_v26  ;;  %v1189_v26 = vld [vmem:[%s3218_s3 + $0x268] sm:$0xff] }
  0x9f   : > { %v1001_v11 = vsel %vm998_vm1, %v2350_v44, %v859_v27 }
  0xa1   : > { %v907_v29 = vpop.permute.xlu1 %906 }
  0xa2   : > { %v2824_v30 = vpop.permute.xlu0 %954  ;;  %v1017_v22 = vsel %vm306_vm0, %v1001_v11, %v907_v29 }
  0xa5   : > { %v861_v31 = vpop.permute.xlu1 %860 }
  0xa6   : > { %v2826_v32 = vpop.permute.xlu0 %908  ;;  %v1002_v25 = vsel %vm998_vm1, %v2378_v48, %v861_v31 }
  0xa7   : > { %v1018_v48 = vsel %vm306_vm0, %v1002_v25, %v2826_v32 }
  0xa9   : > { %v2828_v33 = vpop.permute.xlu1 %956 }
  0xaa   : > { %v2830_v35 = vpop.permute.xlu0 %862  ;;  %v1035_v32 = vsel %vm1031_vm2, %v1018_v48, %v2828_v33 }
  0xad   : > { %v2832_v37 = vpop.permute.xlu1 %910 }
  0xae   : > { %v2834_v38 = vpop.permute.xlu0 %958 }
  0xb1   : > { %v2836_v39 = vpop.permute.xlu1 %864 }
  0xb2   : > { %v2838_v41 = vpop.permute.xlu0 %912 }
  0xb5   : > { %v2840_v42 = vpop.permute.xlu1 %960 }
  0xb6   : > { %v2842_v43 = vpop.permute.xlu0 %866 }
  0xb9   : > { %v2844_v46 = vpop.permute.xlu1 %914 }
  0xba   : > { %v2846_v47 = vpop.permute.xlu0 %962 }
  0xbd   : > { %v2848_v49 = vpop.permute.xlu1 %868 }
  0xbe   : > { %v2850_v50 = vpop.permute.xlu0 %916 }
  0xc1   : > { %v2852_v51 = vpop.permute.xlu1 %964 }
  0xc2   : > { %v2854_v54 = vpop.permute.xlu0 %870 }
  0xc5   : > { %v2856_v55 = vpop.permute.xlu1 %918 }
  0xc6   : > { %v2858_v57 = vpop.permute.xlu0 %966 }
  0xc9   : > { %v2862_v59 = vpop.permute.xlu1 %872 }
  0xca   : > { %v2867_v2 = vpop.permute.xlu0 %920 }
  0xcd   : > { %v2871_v10 = vpop.permute.xlu1 %968 }
  0xce   : > { %v2881_v24 = vpop.permute.xlu0 %874 }
  0xd1   : > { %v2888_v29 = vpop.permute.xlu1 %922 }
  0xd2   : > { %v2900_v11 = vpop.permute.xlu0 %970 }
  0xdd   : > { %v421_v63 = vpop.f32.mrf.mxu0  ;;  %v582_v1 = vpop.f32.mrf.mxu1 }
  0xde   : > { %v1048_v12 = vmul.f32 %v1032_v4, %v421_v63  ;;  %v1050_v15 = vmul.f32 %v1032_v4, %v582_v1 }
  0xdf   : > { %v423_v5 = vpop.f32.mrf.mxu0  ;;  %v584_v6 = vpop.f32.mrf.mxu1 }
  0xe0   : > { %v1049_v9 = vmul.f32 %v1032_v4, %v423_v5  ;;  %v1051_v36 = vmul.f32 %v1032_v4, %v584_v6  ;;  %v1003_v5 = vsel %vm998_vm1, %v2404_v52, %v2830_v35 }
  0xe1   : > { %v427_v40 = vpop.f32.mrf.mxu0  ;;  %v588_v16 = vpop.f32.mrf.mxu1  ;;  %v1019_v52 = vsel %vm306_vm0, %v1003_v5, %v2832_v37  ;;  %v1187_v37 = vld [vmem:[%s3218_s3 + $0x258] sm:$0xff] }
  0xe2   : > { %1263 = vmatprep.mubr.f32.mxu1 %v1049_v9  ;;  %1408 = vmatprep.mubr.f32.mxu0 %v1051_v36  ;;  %v1052_v27 = vmul.f32 %v1033_v18, %v427_v40  ;;  %v1054_v58 = vmul.f32 %v1033_v18, %v588_v16  ;;  %v2906_v16 = vpop.permute.xlu1 %876 }
  0xe3   : > { %v429_v19 = vpop.f32.mrf.mxu0  ;;  %v590_v21 = vpop.f32.mrf.mxu1  ;;  %1264 = vmatmul.mubr.f32.vlgmr.msra.gmra.mxu1 %v1048_v12  ;;  %1409 = vmatmul.mubr.f32.vlgmr.msra.gmra.mxu0 %v1050_v15 }
  0xe4   : > { %v1053_v23 = vmul.f32 %v1033_v18, %v429_v19  ;;  %v1055_v44 = vmul.f32 %v1033_v18, %v590_v21  ;;  %2054 = vmatpush3.msra.mxu1 %v2804_v13  ;;  %v1034_v13 = vsel %vm1031_vm2, %v1017_v22, %v2824_v30  ;;  %v1188_v30 = vld [vmem:[%s3218_s3 + $0x260] sm:$0xff]  ;;  %v1036_v22 = vsel %vm1031_vm2, %v1019_v52, %v2834_v38 }
  0xe5   : > { %v433_v60 = vpop.f32.mrf.mxu0  ;;  %v594_v62 = vpop.f32.mrf.mxu1  ;;  %2055 = vmatprep.subr.mxu1 %v1190_v17  ;;  %v1007_v52 = vsel %vm998_vm1, %v2524_v8, %v2854_v54 }
  0xe6   : > { %1268 = vmatprep.mubr.f32.mxu1 %v1053_v23  ;;  %1413 = vmatprep.mubr.f32.mxu0 %v1055_v44  ;;  %v1056_v6 = vmul.f32 %v1034_v13, %v433_v60  ;;  %v1058_v7 = vmul.f32 %v1034_v13, %v594_v62  ;;  %v1023_v8 = vsel %vm306_vm0, %v1007_v52, %v2856_v55  ;;  %v1183_v55 = vld [vmem:[%s3218_s3 + $0x238] sm:$0xff] }
  0xe7   : > { %v435_v63 = vpop.f32.mrf.mxu0  ;;  %v596_v1 = vpop.f32.mrf.mxu1  ;;  %1269 = vmatmul.mubr.f32.gmra.mxu1 %v1052_v27  ;;  %1414 = vmatmul.mubr.f32.gmra.mxu0 %v1054_v58  ;;  %v1005_v58 = vsel %vm998_vm1, %v2461_v61, %v2842_v43 }
  0xe8   : > { %v1057_v31 = vmul.f32 %v1034_v13, %v435_v63  ;;  %v1059_v4 = vmul.f32 %v1034_v13, %v596_v1  ;;  %2056 = vmatpush3.msra.mxu1 %v1190_v17  ;;  %v1004_v17 = vsel %vm998_vm1, %v2432_v56, %v2836_v39  ;;  %v2918_v27 = vpop.permute.xlu0 %924  ;;  %v2926_v13 = vpop.permute.xlu1 %972  ;;  %v1021_v61 = vsel %vm306_vm0, %v1005_v58, %v2844_v46 }
  0xe9   : > { %v439_v9 = vpop.f32.mrf.mxu0  ;;  %v600_v36 = vpop.f32.mrf.mxu1  ;;  %2057 = vmatprep.subr.mxu1 %v1189_v26  ;;  %v1020_v56 = vsel %vm306_vm0, %v1004_v17, %v2838_v41  ;;  %v1186_v41 = vld [vmem:[%s3218_s3 + $0x250] sm:$0xff]  ;;  %v1038_v46 = vsel %vm1031_vm2, %v1021_v61, %v2846_v47 }
  0xea   : > { %1273 = vmatprep.mubr.f32.mxu1 %v1057_v31  ;;  %1418 = vmatprep.mubr.f32.mxu0 %v1059_v4  ;;  %v1060_v18 = vmul.f32 %v1035_v32, %v439_v9  ;;  %v1062_v19 = vmul.f32 %v1035_v32, %v600_v36  ;;  %v1037_v63 = vsel %vm1031_vm2, %v1020_v56, %v2840_v42  ;;  %v1185_v42 = vld [vmem:[%s3218_s3 + $0x248] sm:$0xff] }
  0xeb   : > { %v441_v12 = vpop.f32.mrf.mxu0  ;;  %v602_v15 = vpop.f32.mrf.mxu1  ;;  %1274 = vmatmul.mubr.f32.gmra.mxu1 %v1056_v6  ;;  %1419 = vmatmul.mubr.f32.gmra.mxu0 %v1058_v7  ;;  %v1006_v4 = vsel %vm998_vm1, %v2495_v3, %v2848_v49 }
  0xec   : > { %v1061_v35 = vmul.f32 %v1035_v32, %v441_v12  ;;  %v1063_v40 = vmul.f32 %v1035_v32, %v602_v15  ;;  %2058 = vmatpush3.msra.mxu1 %v1189_v26  ;;  %v2938_v36 = vpop.permute.xlu0 %878  ;;  %v1022_v3 = vsel %vm306_vm0, %v1006_v4, %v2850_v50  ;;  %v2944_v15 = vpop.permute.xlu1 %926  ;;  %v1184_v50 = vld [vmem:[%s3218_s3 + $0x240] sm:$0xff] }
  0xed   : > { %v445_v21 = vpop.f32.mrf.mxu0  ;;  %v606_v33 = vpop.f32.mrf.mxu1  ;;  %2059 = vmatprep.subr.mxu1 %v1188_v30 }
  0xee   : > { %1278 = vmatprep.mubr.f32.mxu1 %v1061_v35  ;;  %1423 = vmatprep.mubr.f32.mxu0 %v1063_v40  ;;  %v1064_v60 = vmul.f32 %v1036_v22, %v445_v21  ;;  %v1066_v62 = vmul.f32 %v1036_v22, %v606_v33 }
  0xef   : > { %v447_v23 = vpop.f32.mrf.mxu0  ;;  %v608_v44 = vpop.f32.mrf.mxu1  ;;  %1279 = vmatmul.mubr.f32.gmra.mxu1 %v1060_v18  ;;  %1424 = vmatmul.mubr.f32.gmra.mxu0 %v1062_v19  ;;  %v1039_v18 = vsel %vm1031_vm2, %v1022_v3, %v2852_v51 }
  0xf0   : > { %v1065_v39 = vmul.f32 %v1036_v22, %v447_v23  ;;  %v1067_v25 = vmul.f32 %v1036_v22, %v608_v44  ;;  %2060 = vmatpush3.msra.mxu1 %v1188_v30  ;;  %v1008_v22 = vsel %vm998_vm1, %v2558_v14, %v2862_v59 }
  0xf1   : > { %v451_v26 = vpop.f32.mrf.mxu0  ;;  %v612_v38 = vpop.f32.mrf.mxu1  ;;  %2061 = vmatprep.subr.mxu1 %v1187_v37  ;;  %v1024_v14 = vsel %vm306_vm0, %v1008_v22, %v2867_v2 }
  0xf2   : > { %1283 = vmatprep.mubr.f32.mxu1 %v1065_v39  ;;  %1428 = vmatprep.mubr.f32.mxu0 %v1067_v25  ;;  %v1068_v5 = vmul.f32 %v1037_v63, %v451_v26  ;;  %v1070_v6 = vmul.f32 %v1037_v63, %v612_v38  ;;  %v2964_v39 = vpop.permute.xlu1 %880  ;;  %v1040_v25 = vsel %vm1031_vm2, %v1023_v8, %v2858_v57  ;;  %v1182_v57 = vld [vmem:[%s3218_s3 + $0x230] sm:$0xff] }
  0xf3   : > { %v453_v1 = vpop.f32.mrf.mxu0  ;;  %v614_v48 = vpop.f32.mrf.mxu1  ;;  %1284 = vmatmul.mubr.f32.gmra.mxu1 %v1064_v60  ;;  %1429 = vmatmul.mubr.f32.gmra.mxu0 %v1066_v62  ;;  %v1009_v26 = vsel %vm998_vm1, %v2590_v20, %v2881_v24  ;;  %v1041_v2 = vsel %vm1031_vm2, %v1024_v14, %v2871_v10 }
  0xf4   : > { %v1069_v43 = vmul.f32 %v1037_v63, %v453_v1  ;;  %v1071_v31 = vmul.f32 %v1037_v63, %v614_v48  ;;  %2062 = vmatpush3.msra.mxu1 %v1187_v37  ;;  %v2956_v37 = vpop.permute.xlu0 %974  ;;  %v1025_v20 = vsel %vm306_vm0, %v1009_v26, %v2888_v29  ;;  %v1181_v29 = vld [vmem:[%s3218_s3 + $0x228] sm:$0xff] }
  0xf5   : > { %v457_v7 = vpop.f32.mrf.mxu0  ;;  %v618_v9 = vpop.f32.mrf.mxu1  ;;  %2063 = vmatprep.subr.mxu1 %v1186_v41 }
  0xf6   : > { %1288 = vmatprep.mubr.f32.mxu1 %v1069_v43  ;;  %1433 = vmatprep.mubr.f32.mxu0 %v1071_v31  ;;  %v1072_v35 = vmul.f32 %v1038_v46, %v457_v7  ;;  %v1074_v40 = vmul.f32 %v1038_v46, %v618_v9  ;;  %v2982_v4 = vpop.permute.xlu1 %976 }
  0xf7   : > { %v459_v30 = vpop.f32.mrf.mxu0  ;;  %v620_v32 = vpop.f32.mrf.mxu1  ;;  %1289 = vmatmul.mubr.f32.gmra.mxu1 %v1068_v5  ;;  %1434 = vmatmul.mubr.f32.gmra.mxu0 %v1070_v6  ;;  %v1010_v5 = vsel %vm998_vm1, %v2628_v28, %v2906_v16 }
  0xf8   : > { %v1073_v49 = vmul.f32 %v1038_v46, %v459_v30  ;;  %v1075_v12 = vmul.f32 %v1038_v46, %v620_v32  ;;  %2064 = vmatpush3.msra.mxu1 %v1186_v41  ;;  %v2976_v48 = vpop.permute.xlu0 %928  ;;  %v1026_v28 = vsel %vm306_vm0, %v1010_v5, %v2918_v27 }
  0xf9   : > { %v463_v17 = vpop.f32.mrf.mxu0  ;;  %v624_v47 = vpop.f32.mrf.mxu1  ;;  %2065 = vmatprep.subr.mxu1 %v1185_v42 }
  0xfa   : > { %1293 = vmatprep.mubr.f32.mxu1 %v1073_v49  ;;  %1438 = vmatprep.mubr.f32.mxu0 %v1075_v12  ;;  %v1076_v23 = vmul.f32 %v1039_v18, %v463_v17  ;;  %v1078_v44 = vmul.f32 %v1039_v18, %v624_v47  ;;  %v1011_v49 = vsel %vm998_vm1, %v2656_v34, %v2938_v36  ;;  %v931_v27 = vpop.permute.xlu1 %930 }
  0xfb   : > { %v465_v19 = vpop.f32.mrf.mxu0  ;;  %v626_v21 = vpop.f32.mrf.mxu1  ;;  %1294 = vmatmul.mubr.f32.gmra.mxu1 %v1072_v35  ;;  %1439 = vmatmul.mubr.f32.gmra.mxu0 %v1074_v40  ;;  %v1043_v17 = vsel %vm1031_vm2, %v1026_v28, %v2926_v13  ;;  %v1027_v34 = vsel %vm306_vm0, %v1011_v49, %v2944_v15  ;;  %v1179_v13 = vld [vmem:[%s3218_s3 + $0x218] sm:$0xff] }
  0xfc   : > { %v1077_v54 = vmul.f32 %v1039_v18, %v465_v19  ;;  %v1079_v33 = vmul.f32 %v1039_v18, %v626_v21  ;;  %2066 = vmatpush3.msra.mxu1 %v1185_v42  ;;  %v1042_v42 = vsel %vm1031_vm2, %v1025_v20, %v2900_v11  ;;  %v883_v3 = vpop.permute.xlu0 %882  ;;  %v1180_v11 = vld [vmem:[%s3218_s3 + $0x220] sm:$0xff]  ;;  %v1012_v19 = vsel %vm998_vm1, %v2694_v45, %v2964_v39 }
  0xfd   : > { %v469_v56 = vpop.f32.mrf.mxu0  ;;  %v630_v51 = vpop.f32.mrf.mxu1  ;;  %2067 = vmatprep.subr.mxu1 %v1184_v50  ;;  %v1044_v15 = vsel %vm1031_vm2, %v1027_v34, %v2956_v37  ;;  %v1028_v45 = vsel %vm306_vm0, %v1012_v19, %v2976_v48  ;;  %v1178_v37 = vld [vmem:[%s3218_s3 + $0x210] sm:$0xff] }
  0xfe   : > { %1298 = vmatprep.mubr.f32.mxu1 %v1077_v54  ;;  %1443 = vmatprep.mubr.f32.mxu0 %v1079_v33  ;;  %v1080_v38 = vmul.f32 %v1040_v25, %v469_v56  ;;  %v1082_v41 = vmul.f32 %v1040_v25, %v630_v51  ;;  %v1013_v56 = vsel %vm998_vm1, %v2722_v53, %v883_v3  ;;  %v885_v39 = vpop.permute.xlu1 %884 }
  0xff   : > { %v471_v58 = vpop.f32.mrf.mxu0  ;;  %v632_v60 = vpop.f32.mrf.mxu1  ;;  %1299 = vmatmul.mubr.f32.gmra.mxu1 %v1076_v23  ;;  %1444 = vmatmul.mubr.f32.gmra.mxu0 %v1078_v44  ;;  %v1029_v53 = vsel %vm306_vm0, %v1013_v56, %v931_v27 }
 0x100   : > { %v1081_v59 = vmul.f32 %v1040_v25, %v471_v58  ;;  %v1083_v62 = vmul.f32 %v1040_v25, %v632_v60  ;;  %2068 = vmatpush3.msra.mxu1 %v1184_v50  ;;  %v979_v22 = vpop.permute.xlu0 %978 }
 0x101   : > { %v475_v63 = vpop.f32.mrf.mxu0  ;;  %v636_v1 = vpop.f32.mrf.mxu1  ;;  %2069 = vmatprep.subr.mxu1 %v1183_v55 }
 0x102   : > { %1303 = vmatprep.mubr.f32.mxu1 %v1081_v59  ;;  %1448 = vmatprep.mubr.f32.mxu0 %v1083_v62  ;;  %v1084_v6 = vmul.f32 %v1041_v2, %v475_v63  ;;  %v1086_v7 = vmul.f32 %v1041_v2, %v636_v1  ;;  %v1045_v59 = vsel %vm1031_vm2, %v1028_v45, %v2982_v4  ;;  %v981_v20 = vpop.permute.xlu1 %980 }
 0x103   : > { %v477_v61 = vpop.f32.mrf.mxu0  ;;  %v638_v43 = vpop.f32.mrf.mxu1  ;;  %1304 = vmatmul.mubr.f32.gmra.mxu1 %v1080_v38  ;;  %1449 = vmatmul.mubr.f32.gmra.mxu0 %v1082_v41  ;;  %v1014_v63 = vsel %vm998_vm1, %v2763_v0, %v885_v39 }
 0x104   : > { %v1085_v24 = vmul.f32 %v1041_v2, %v477_v61  ;;  %v1087_v31 = vmul.f32 %v1041_v2, %v638_v43  ;;  %2070 = vmatpush3.msra.mxu1 %v1183_v55  ;;  %v933_v1 = vpop.permute.xlu0 %932  ;;  %v1046_v43 = vsel %vm1031_vm2, %v1029_v53, %v979_v22 }
 0x105   : > { %v481_v9 = vpop.f32.mrf.mxu0  ;;  %v642_v10 = vpop.f32.mrf.mxu1  ;;  %2071 = vmatprep.subr.mxu1 %v1182_v57 }
 0x106   : > { %1308 = vmatprep.mubr.f32.mxu1 %v1085_v24  ;;  %1453 = vmatprep.mubr.f32.mxu0 %v1087_v31  ;;  %v1088_v12 = vmul.f32 %v1042_v42, %v481_v9  ;;  %v1090_v52 = vmul.f32 %v1042_v42, %v642_v10  ;;  %v1177_v24 = vld [vmem:[%s3218_s3 + $0x208] sm:$0xff]  ;;  %v1030_v31 = vsel %vm306_vm0, %v1014_v63, %v933_v1 }
 0x107   : > { %v483_v46 = vpop.f32.mrf.mxu0  ;;  %v644_v30 = vpop.f32.mrf.mxu1  ;;  %1309 = vmatmul.mubr.f32.gmra.mxu1 %v1084_v6  ;;  %1454 = vmatmul.mubr.f32.gmra.mxu0 %v1086_v7 }
 0x108   : > { %v1089_v16 = vmul.f32 %v1042_v42, %v483_v46  ;;  %v1091_v32 = vmul.f32 %v1042_v42, %v644_v30  ;;  %2072 = vmatpush3.msra.mxu1 %v1182_v57  ;;  %v1047_v42 = vsel %vm1031_vm2, %v1030_v31, %v981_v20  ;;  %v1176_v46 = vld [vmem:[%s3218_s3 + $0x200] sm:$0xff] }
 0x109   : > { %v487_v35 = vpop.f32.mrf.mxu0  ;;  %v648_v40 = vpop.f32.mrf.mxu1  ;;  %2073 = vmatprep.subr.mxu1 %v1181_v29 }
 0x10a   : > { %1313 = vmatprep.mubr.f32.mxu1 %v1089_v16  ;;  %1458 = vmatprep.mubr.f32.mxu0 %v1091_v32  ;;  %v1092_v21 = vmul.f32 %v1043_v17, %v487_v35  ;;  %v1094_v8 = vmul.f32 %v1043_v17, %v648_v40 }
 0x10b   : > { %v489_v47 = vpop.f32.mrf.mxu0  ;;  %v650_v50 = vpop.f32.mrf.mxu1  ;;  %1314 = vmatmul.mubr.f32.gmra.mxu1 %v1088_v12  ;;  %1459 = vmatmul.mubr.f32.gmra.mxu0 %v1090_v52 }
 0x10c   : > { %v1093_v36 = vmul.f32 %v1043_v17, %v489_v47  ;;  %v1095_v18 = vmul.f32 %v1043_v17, %v650_v50  ;;  %2074 = vmatpush3.msra.mxu1 %v1181_v29 }
 0x10d   : > { %v493_v54 = vpop.f32.mrf.mxu0  ;;  %v654_v33 = vpop.f32.mrf.mxu1  ;;  %2075 = vmatprep.subr.mxu1 %v1180_v11 }
 0x10e   : > { %1318 = vmatprep.mubr.f32.mxu1 %v1093_v36  ;;  %1463 = vmatprep.mubr.f32.mxu0 %v1095_v18  ;;  %v1096_v25 = vmul.f32 %v1044_v15, %v493_v54  ;;  %v1098_v58 = vmul.f32 %v1044_v15, %v654_v33 }
 0x10f   : > { %v495_v23 = vpop.f32.mrf.mxu0  ;;  %v656_v44 = vpop.f32.mrf.mxu1  ;;  %1319 = vmatmul.mubr.f32.gmra.mxu1 %v1092_v21  ;;  %1464 = vmatmul.mubr.f32.gmra.mxu0 %v1094_v8 }
 0x110   : > { %v1097_v51 = vmul.f32 %v1044_v15, %v495_v23  ;;  %v1099_v55 = vmul.f32 %v1044_v15, %v656_v44  ;;  %2076 = vmatpush3.msra.mxu1 %v1180_v11 }
 0x111   : > { %v499_v60 = vpop.f32.mrf.mxu0  ;;  %v660_v14 = vpop.f32.mrf.mxu1  ;;  %2077 = vmatprep.subr.mxu1 %v1179_v13 }
 0x112   : > { %1323 = vmatprep.mubr.f32.mxu1 %v1097_v51  ;;  %1468 = vmatprep.mubr.f32.mxu0 %v1099_v55  ;;  %v1100_v57 = vmul.f32 %v1045_v59, %v499_v60  ;;  %v1102_v48 = vmul.f32 %v1045_v59, %v660_v14 }
 0x113   : > { %v501_v62 = vpop.f32.mrf.mxu0  ;;  %v662_v26 = vpop.f32.mrf.mxu1  ;;  %1324 = vmatmul.mubr.f32.gmra.mxu1 %v1096_v25  ;;  %1469 = vmatmul.mubr.f32.gmra.mxu0 %v1098_v58 }
 0x114   : > { %v1101_v38 = vmul.f32 %v1045_v59, %v501_v62  ;;  %v1103_v41 = vmul.f32 %v1045_v59, %v662_v26  ;;  %2078 = vmatpush3.msra.mxu1 %v1179_v13 }
 0x115   : > { %v505_v2 = vpop.f32.mrf.mxu0  ;;  %v666_v61 = vpop.f32.mrf.mxu1  ;;  %2079 = vmatprep.subr.mxu1 %v1178_v37 }
 0x116   : > { %1328 = vmatprep.mubr.f32.mxu1 %v1101_v38  ;;  %1473 = vmatprep.mubr.f32.mxu0 %v1103_v41  ;;  %v1104_v7 = vmul.f32 %v1046_v43, %v505_v2  ;;  %v1106_v9 = vmul.f32 %v1046_v43, %v666_v61 }
 0x117   : > { %v507_v4 = vpop.f32.mrf.mxu0  ;;  %v668_v5 = vpop.f32.mrf.mxu1  ;;  %1329 = vmatmul.mubr.f32.gmra.mxu1 %v1100_v57  ;;  %1474 = vmatmul.mubr.f32.gmra.mxu0 %v1102_v48 }
 0x118   : > { %v1105_v0 = vmul.f32 %v1046_v43, %v507_v4  ;;  %v1107_v6 = vmul.f32 %v1046_v43, %v668_v5  ;;  %2080 = vmatpush3.msra.mxu1 %v1178_v37 }
 0x119   : > { %v511_v10 = vpop.f32.mrf.mxu0  ;;  %v672_v29 = vpop.f32.mrf.mxu1  ;;  %2081 = vmatprep.subr.mxu1 %v1177_v24 }
 0x11a   : > { %1333 = vmatprep.mubr.f32.mxu1 %v1105_v0  ;;  %1478 = vmatprep.mubr.f32.mxu0 %v1107_v6  ;;  %v1108_v3 = vmul.f32 %v1047_v42, %v511_v10  ;;  %v1110_v49 = vmul.f32 %v1047_v42, %v672_v29 }
 0x11b   : > { %v513_v30 = vpop.f32.mrf.mxu0  ;;  %v674_v28 = vpop.f32.mrf.mxu1  ;;  %1334 = vmatmul.mubr.f32.gmra.mxu1 %v1104_v7  ;;  %1479 = vmatmul.mubr.f32.gmra.mxu0 %v1106_v9 }
 0x11c   : > { %v1109_v16 = vmul.f32 %v1047_v42, %v513_v30  ;;  %v1111_v32 = vmul.f32 %v1047_v42, %v674_v28  ;;  %2082 = vmatpush3.msra.mxu1 %v1177_v24 }
 0x11d   : > { %v2031_v12 = vpop.f32.mrf.mxu0  ;;  %2083 = vmatprep.subr.mxu1 %v1176_v46 }
 0x11e   : > { %1338 = vmatprep.mubr.f32.mxu1 %v1109_v16  ;;  %1483 = vmatprep.mubr.f32.mxu0 %v1111_v32 }
 0x11f   : > { %v743_v52 = vpop.f32.mrf.mxu0  ;;  %1339 = vmatmul.mubr.f32.gmra.mxu1 %v1108_v3  ;;  %1484 = vmatmul.mubr.f32.gmra.mxu0 %v1110_v49 }
 0x120   : > { %2084 = vmatpush3.msra.mxu1 %v1176_v46  ;;  %2085 = vmatprep.mubr.f32.mxu1 %v743_v52 }
 0x121   : > { %v2034_v35 = vpop.f32.mrf.mxu0 }
 0x123   : > { %v753_v40 = vpop.f32.mrf.mxu0  ;;  %2086 = vmatmul.mubr.f32.vlgmr.msra.gmra.mxu1 %v2031_v12 }
 0x124   : > { %2088 = vmatprep.mubr.f32.mxu1 %v753_v40 }
 0x125   : > { %v2037_v11 = vpop.f32.mrf.mxu0 }
 0x127   : > { %v763_v27 = vpop.f32.mrf.mxu0  ;;  %2089 = vmatmul.mubr.f32.gmra.mxu1 %v2034_v35 }
 0x128   : > { %2091 = vmatprep.mubr.f32.mxu1 %v763_v27 }
 0x129   : > { %v2040_v17 = vpop.f32.mrf.mxu0 }
 0x12b   : > { %v773_v47 = vpop.f32.mrf.mxu0  ;;  %2092 = vmatmul.mubr.f32.gmra.mxu1 %v2037_v11 }
 0x12c   : > { %2094 = vmatprep.mubr.f32.mxu1 %v773_v47  ;;  %v3102_v47 = vld [vmem:[%s3219_s4] ss:$0 sm:$0xff] }
 0x12d   : > { %v2043_v50 = vpop.f32.mrf.mxu0 }
 0x12f   : > { %v783_v34 = vpop.f32.mrf.mxu0  ;;  %2095 = vmatmul.mubr.f32.gmra.mxu1 %v2040_v17 }
 0x130   : > { %2097 = vmatprep.mubr.f32.mxu1 %v783_v34 }
 0x131   : > { %v2046_v36 = vpop.f32.mrf.mxu0 }
 0x133   : > { %v793_v18 = vpop.f32.mrf.mxu0  ;;  %2098 = vmatmul.mubr.f32.gmra.mxu1 %v2043_v50 }
 0x134   : > { %2100 = vmatprep.mubr.f32.mxu1 %v793_v18 }
 0x135   : > { %v2049_v19 = vpop.f32.mrf.mxu0 }
 0x137   : > { %v803_v21 = vpop.f32.mrf.mxu0  ;;  %2101 = vmatmul.mubr.f32.gmra.mxu1 %v2046_v36 }
 0x138   : > { %2103 = vmatprep.mubr.f32.mxu1 %v803_v21 }
 0x139   : > { %v2052_v8 = vpop.f32.mrf.mxu0 }
 0x13b   : > { %v813_v54 = vpop.f32.mrf.mxu0  ;;  %2104 = vmatmul.mubr.f32.gmra.mxu1 %v2049_v19 }
 0x13c   : > { %2106 = vmatprep.mubr.f32.mxu1 %v813_v54 }
 0x13f   : > { %2107 = vmatmul.mubr.f32.gmra.mxu1 %v2052_v8 }
 0x1a3   : > { %v1853_v33 = vpop.f32.mrf.mxu1  ;;  %v3033_v13 = vpop.f32.mrf.mxu0 }
 0x1a5   : > { %v1854_v22 = vpop.f32.mrf.mxu1  ;;  %v3035_v15 = vpop.f32.mrf.mxu0 }
 0x1a6   : > { %v1855_v17 = vadd.f32 %v1854_v22, %v1853_v33 }
 0x1a7   : > { %v1856_v23 = vpop.f32.mrf.mxu1  ;;  %v1936_v44 = vpop.f32.mrf.mxu0 }
 0x1a8   : > { %v1266_v21 = vadd.f32 %v1855_v17, %v3102_v47 }
 0x1a9   : > { %v1857_v45 = vpop.f32.mrf.mxu1  ;;  %v1937_v56 = vpop.f32.mrf.mxu0 }
 0x1aa   : > { %v1858_v11 = vadd.f32 %v1857_v45, %v1856_v23  ;;  %v1938_v8 = vadd.f32 %v1937_v56, %v1936_v44  ;;  %v1935_v45 = vadd.f32 %v3035_v15, %v3033_v13 }
 0x1ab   : > { %v1859_v51 = vpop.f32.mrf.mxu1  ;;  %v3037_v55 = vpop.f32.mrf.mxu0 }
 0x1ac   : > { %v1271_v36 = vadd.f32 %v1858_v11, %v3102_v47  ;;  %v1411_v44 = vadd.f32 %v1935_v45, %v1266_v21 }
 0x1ad   : > { %v1860_v39 = vpop.f32.mrf.mxu1  ;;  %v3039_v25 = vpop.f32.mrf.mxu0 }
 0x1ae   : > { %v1861_v54 = vadd.f32 %v1860_v39, %v1859_v51  ;;  %v1941_v56 = vadd.f32 %v3039_v25, %v3037_v55 }
 0x1af   : > { %v1862_v58 = vpop.f32.mrf.mxu1  ;;  %v1942_v60 = vpop.f32.mrf.mxu0 }
 0x1b1   : > { %v1863_v14 = vpop.f32.mrf.mxu1  ;;  %v1943_v37 = vpop.f32.mrf.mxu0 }
 0x1b2   : > { %v1864_v18 = vadd.f32 %v1863_v14, %v1862_v58  ;;  %v1276_v14 = vadd.f32 %v1861_v54, %v3102_v47 }
 0x1b3   : > { %v1865_v59 = vpop.f32.mrf.mxu1  ;;  %v3041_v53 = vpop.f32.mrf.mxu0 }
 0x1b5   : > { %v1866_v62 = vpop.f32.mrf.mxu1  ;;  %v3043_v26 = vpop.f32.mrf.mxu0 }
 0x1b6   : > { %v1867_v11 = vadd.f32 %v1866_v62, %v1865_v59 }
 0x1b7   : > { %v1868_v38 = vpop.f32.mrf.mxu1  ;;  %v3045_v41 = vpop.f32.mrf.mxu0 }
 0x1b8   : > { %v1286_v62 = vadd.f32 %v1867_v11, %v3102_v47 }
 0x1b9   : > { %v1869_v63 = vpop.f32.mrf.mxu1  ;;  %v3047_v1 = vpop.f32.mrf.mxu0 }
 0x1ba   : > { %v1870_v33 = vadd.f32 %v1869_v63, %v1868_v38  ;;  %v1950_v55 = vadd.f32 %v3047_v1, %v3045_v41 }
 0x1bb   : > { %v3049_v57 = vpop.f32.mrf.mxu1  ;;  %v3051_v48 = vpop.f32.mrf.mxu0 }
 0x1bc   : > { %v1291_v51 = vadd.f32 %v1870_v33, %v3102_v47 }
 0x1bd   : > { %v1872_v2 = vpop.f32.mrf.mxu1  ;;  %v3053_v61 = vpop.f32.mrf.mxu0 }
 0x1be   : > { %v1873_v25 = vadd.f32 %v1872_v2, %v3049_v57 }
 0x1bf   : > { %v1874_v43 = vpop.f32.mrf.mxu1  ;;  %v3055_v20 = vpop.f32.mrf.mxu0 }
 0x1c0   : > { %v1296_v57 = vadd.f32 %v1873_v25, %v3102_v47 }
 0x1c1   : > { %v1875_v24 = vpop.f32.mrf.mxu1  ;;  %v3057_v31 = vpop.f32.mrf.mxu0 }
 0x1c2   : > { %v1876_v15 = vadd.f32 %v1875_v24, %v1874_v43  ;;  %v1947_v43 = vadd.f32 %v3043_v26, %v3041_v53  ;;  %v1956_v54 = vadd.f32 %v3057_v31, %v3055_v20 }
 0x1c3   : > { %v3059_v4 = vpop.f32.mrf.mxu1  ;;  %v3061_v5 = vpop.f32.mrf.mxu0 }
 0x1c5   : > { %v3063_v0 = vpop.f32.mrf.mxu1  ;;  %v3065_v6 = vpop.f32.mrf.mxu0 }
 0x1c6   : > { %v1879_v53 = vadd.f32 %v3063_v0, %v3059_v4 }
 0x1c7   : > { %v3067_v7 = vpop.f32.mrf.mxu1  ;;  %v3069_v9 = vpop.f32.mrf.mxu0 }
 0x1c9   : > { %v1881_v10 = vpop.f32.mrf.mxu1  ;;  %v3071_v29 = vpop.f32.mrf.mxu0 }
 0x1ca   : > { %v1882_v21 = vadd.f32 %v1881_v10, %v3067_v7  ;;  %v1953_v10 = vadd.f32 %v3053_v61, %v3051_v48  ;;  %v1306_v48 = vadd.f32 %v1879_v53, %v3102_v47  ;;  %v1962_v61 = vadd.f32 %v3071_v29, %v3069_v9 }
 0x1cb   : > { %v3073_v42 = vpop.f32.mrf.mxu1  ;;  %v3075_v46 = vpop.f32.mrf.mxu0 }
 0x1cd   : > { %v3077_v30 = vpop.f32.mrf.mxu1  ;;  %v3081_v16 = vpop.f32.mrf.mxu0 }
 0x1ce   : > { %v1885_v0 = vadd.f32 %v3077_v30, %v3073_v42 }
 0x1cf   : > { %v3079_v28 = vpop.f32.mrf.mxu1  ;;  %v3087_v49 = vpop.f32.mrf.mxu0 }
 0x1d0   : > { %v1316_v29 = vadd.f32 %v1885_v0, %v3102_v47 }
 0x1d1   : > { %v3083_v32 = vpop.f32.mrf.mxu1  ;;  %v3093_v35 = vpop.f32.mrf.mxu0 }
 0x1d2   : > { %v1888_v33 = vadd.f32 %v3083_v32, %v3079_v28 }
 0x1d3   : > { %v3085_v3 = vpop.f32.mrf.mxu1  ;;  %v3104_v50 = vpop.f32.mrf.mxu0 }
 0x1d4   : > { %3222 = vst [vmem:[#allocation3_spill] sm:$0xff] %v3104_v50  ;;  %v1281_v50 = vadd.f32 %v1864_v18, %v3102_v47 }
 0x1d5   : > { %v3089_v12 = vpop.f32.mrf.mxu1  ;;  %v3112_v22 = vpop.f32.mrf.mxu0 }
 0x1d7   : > { %v3091_v52 = vpop.f32.mrf.mxu1  ;;  %v3123_v39 = vpop.f32.mrf.mxu0 }
 0x1d9   : > { %v3095_v40 = vpop.f32.mrf.mxu1  ;;  %v1973_v24 = vpop.f32.mrf.mxu0 }
 0x1da   : > { %v1894_v42 = vadd.f32 %v3095_v40, %v3091_v52  ;;  %v1965_v40 = vadd.f32 %v3081_v16, %v3075_v46 }
 0x1db   : > { %v3097_v27 = vpop.f32.mrf.mxu1  ;;  %v3154_v45 = vpop.f32.mrf.mxu0 }
 0x1dc   : > { %3221 = vst [vmem:[#allocation2_spill] sm:$0xff] %v3097_v27  ;;  %v1944_v27 = vadd.f32 %v1943_v37, %v1942_v60 }
 0x1dd   : > { %v3106_v34 = vpop.f32.mrf.mxu1 }
 0x1de   : > { %3223 = vst [vmem:[#allocation4_spill] sm:$0xff] %v3106_v34  ;;  %v1416_v34 = vadd.f32 %v1938_v8, %v1271_v36  ;;  %v1426_v37 = vadd.f32 %v1944_v27, %v1281_v50  ;;  %v1421_v36 = vadd.f32 %v1941_v56, %v1276_v14  ;;  %v1436_v27 = vadd.f32 %v1950_v55, %v1291_v51  ;;  %v1976_v51 = vpop.f32.mrf.mxu0 }
 0x1df   : > { %v3109_v19 = vpop.f32.mrf.mxu1  ;;  %v1301_v50 = vadd.f32 %v1876_v15, %v3102_v47  ;;  %v1431_v8 = vadd.f32 %v1947_v43, %v1286_v62  ;;  %v1321_v56 = vadd.f32 %v1888_v33, %v3102_v47 }
 0x1e0   : > { %v1978_v62 = vpop.f32.mrf.mxu0 }
 0x1e1   : > { %v3114_v23 = vpop.f32.mrf.mxu1  ;;  %v1446_v4 = vadd.f32 %v1956_v54, %v1301_v50 }
 0x1e2   : > { %v1979_v50 = vpop.f32.mrf.mxu0 }
 0x1e3   : > { %v2087_v58 = vpop.f32.mrf.mxu1  ;;  %v3224_v46 = vld [vmem:[#allocation2_spill] sm:$0xff]  ;;  %v1980_v54 = vadd.f32 %v1979_v50, %v1978_v62 }
 0x1e4   : > { %v1561_v17 = vadd.f32 %v2087_v58, %v1416_v34  ;;  %v1311_v58 = vadd.f32 %v1882_v21, %v3102_v47 }
 0x1e5   : > { %v1555_v13 = vpop.f32.mrf.mxu1  ;;  %v3225_v16 = vld [vmem:[#allocation4_spill] sm:$0xff] }
 0x1e6   : > { %v1635_v59 = vmax.f32 %v1561_v17, 0.0  ;;  %v1556_v60 = vadd.f32 %v1555_v13, %v1411_v44  ;;  %v1441_v17 = vadd.f32 %v1953_v10, %v1296_v57  ;;  %v1959_v44 = vadd.f32 %v3065_v6, %v3061_v5 }
 0x1e7   : > { %v2090_v38 = vpop.f32.mrf.mxu1  ;;  %v1456_v9 = vadd.f32 %v1962_v61, %v1311_v58  ;;  %v1891_v5 = vadd.f32 %v3089_v12, %v3085_v3  ;;  %v1897_v43 = vadd.f32 %v3225_v16, %v3224_v46 }
 0x1e8   : > { %1652 = vst.msk [vmem:[%s3129_s26 + $0x8] sm:$0xff] %vm1650_vm3, %v1635_v59  ;;  %v1634_v63 = vmax.f32 %v1556_v60, 0.0  ;;  %v1571_v34 = vadd.f32 %v2090_v38, %v1426_v37  ;;  %v1968_v59 = vadd.f32 %v3093_v35, %v3087_v49  ;;  %v1451_v52 = vadd.f32 %v1959_v44, %v1306_v48 }
 0x1e9   : > { %v1565_v18 = vpop.f32.mrf.mxu1  ;;  %v1331_v38 = vadd.f32 %v1894_v42, %v3102_v47  ;;  %v1900_v49 = vadd.f32 %v3114_v23, %v3109_v19  ;;  %v1326_v35 = vadd.f32 %v1891_v5, %v3102_v47  ;;  %v3226_v19 = vld [vmem:[#allocation3_spill] sm:$0xff] }
 0x1ea   : > { %1651 = vst.msk [vmem:[%s3129_s26] sm:$0xff] %vm1650_vm3, %v1634_v63  ;;  %v1637_v41 = vmax.f32 %v1571_v34, 0.0  ;;  %v1566_v1 = vadd.f32 %v1565_v18, %v1421_v36  ;;  %v1466_v25 = vadd.f32 %v1968_v59, %v1321_v56  ;;  %v1461_v34 = vadd.f32 %v1965_v40, %v1316_v29 }
 0x1eb   : > { %v2093_v2 = vpop.f32.mrf.mxu1  ;;  %v1974_v36 = vadd.f32 %v1973_v24, %v3123_v39  ;;  %v1971_v23 = vadd.f32 %v3112_v22, %v3226_v19 }
 0x1ec   : > { %1654 = vst.msk [vmem:[%s3129_s26 + $0x18] sm:$0xff] %vm1650_vm3, %v1637_v41  ;;  %v1636_v26 = vmax.f32 %v1566_v1, 0.0  ;;  %v1581_v7 = vadd.f32 %v2093_v2, %v1436_v27  ;;  %v1341_v41 = vadd.f32 %v1900_v49, %v3102_v47 }
 0x1ed   : > { %v1575_v11 = vpop.f32.mrf.mxu1  ;;  %v1476_v24 = vadd.f32 %v1974_v36, %v1331_v38  ;;  %v1471_v2 = vadd.f32 %v1971_v23, %v1326_v35 }
 0x1ee   : > { %1653 = vst.msk [vmem:[%s3129_s26 + $0x10] sm:$0xff] %vm1650_vm3, %v1636_v26  ;;  %v1639_v20 = vmax.f32 %v1581_v7, 0.0  ;;  %v1576_v31 = vadd.f32 %v1575_v11, %v1431_v8  ;;  %v1336_v8 = vadd.f32 %v1897_v43, %v3102_v47  ;;  %v1977_v7 = vadd.f32 %v1976_v51, %v3154_v45 }
 0x1ef   : > { %v2096_v14 = vpop.f32.mrf.mxu1  ;;  %v1486_v11 = vadd.f32 %v1980_v54, %v1341_v41 }
 0x1f0   : > { %1656 = vst.msk [vmem:[%s3129_s26 + $0x28] sm:$0xff] %vm1650_vm3, %v1639_v20  ;;  %v1638_v28 = vmax.f32 %v1576_v31, 0.0  ;;  %v1591_v32 = vadd.f32 %v2096_v14, %v1446_v4  ;;  %v1481_v31 = vadd.f32 %v1977_v7, %v1336_v8 }
 0x1f1   : > { %v1585_v13 = vpop.f32.mrf.mxu1 }
 0x1f2   : > { %1655 = vst.msk [vmem:[%s3129_s26 + $0x20] sm:$0xff] %vm1650_vm3, %v1638_v28  ;;  %v1641_v30 = vmax.f32 %v1591_v32, 0.0  ;;  %v1586_v15 = vadd.f32 %v1585_v13, %v1441_v17 }
 0x1f3   : > { %v2099_v6 = vpop.f32.mrf.mxu1 }
 0x1f4   : > { %1658 = vst.msk [vmem:[%s3129_s26 + $0x38] sm:$0xff] %vm1650_vm3, %v1641_v30  ;;  %v1640_v60 = vmax.f32 %v1586_v15, 0.0  ;;  %v1601_v37 = vadd.f32 %v2099_v6, %v1456_v9 }
 0x1f5   : > { %v1595_v55 = vpop.f32.mrf.mxu1 }
 0x1f6   : > { %1657 = vst.msk [vmem:[%s3129_s26 + $0x30] sm:$0xff] %vm1650_vm3, %v1640_v60  ;;  %v1643_v3 = vmax.f32 %v1601_v37, 0.0  ;;  %v1596_v12 = vadd.f32 %v1595_v55, %v1451_v52 }
 0x1f7   : > { %v2102_v63 = vpop.f32.mrf.mxu1 }
 0x1f8   : > { %1660 = vst.msk [vmem:[%s3129_s26 + $0x48] sm:$0xff] %vm1650_vm3, %v1643_v3  ;;  %v1642_v18 = vmax.f32 %v1596_v12, 0.0  ;;  %v1611_v27 = vadd.f32 %v2102_v63, %v1466_v25 }
 0x1f9   : > { %v1605_v21 = vpop.f32.mrf.mxu1 }
 0x1fa   : > { %1659 = vst.msk [vmem:[%s3129_s26 + $0x40] sm:$0xff] %vm1650_vm3, %v1642_v18  ;;  %v1645_v1 = vmax.f32 %v1611_v27, 0.0  ;;  %v1606_v39 = vadd.f32 %v1605_v21, %v1461_v34 }
 0x1fb   : > { %v2105_v57 = vpop.f32.mrf.mxu1 }
 0x1fc   : > { %1662 = vst.msk [vmem:[%s3129_s26 + $0x58] sm:$0xff] %vm1650_vm3, %v1645_v1  ;;  %v1644_v22 = vmax.f32 %v1606_v39, 0.0  ;;  %v1621_v53 = vadd.f32 %v2105_v57, %v1476_v24 }
 0x1fd   : > { %v1615_v26 = vpop.f32.mrf.mxu1 }
 0x1fe   : > { %1661 = vst.msk [vmem:[%s3129_s26 + $0x50] sm:$0xff] %vm1650_vm3, %v1644_v22  ;;  %v1647_v10 = vmax.f32 %v1621_v53, 0.0  ;;  %v1616_v33 = vadd.f32 %v1615_v26, %v1471_v2 }
 0x1ff   : > { %v2108_v58 = vpop.f32.mrf.mxu1 }
 0x200   : > { %1664 = vst.msk [vmem:[%s3129_s26 + $0x68] sm:$0xff] %vm1650_vm3, %v1647_v10  ;;  %v1646_v47 = vmax.f32 %v1616_v33, 0.0  ;;  %v1631_v20 = vadd.f32 %v2108_v58, %v1486_v11 }
 0x201   : > { %v1625_v4 = vpop.f32.mrf.mxu1 }
 0x202   : > { %1663 = vst.msk [vmem:[%s3129_s26 + $0x60] sm:$0xff] %vm1650_vm3, %v1646_v47  ;;  %v1649_v0 = vmax.f32 %v1631_v20, 0.0  ;;  %v1626_v14 = vadd.f32 %v1625_v4, %v1481_v31 }
 0x204   : > { %1666 = vst.msk [vmem:[%s3129_s26 + $0x78] sm:$0xff] %vm1650_vm3, %v1649_v0  ;;  %v1648_v45 = vmax.f32 %v1626_v14, 0.0 }
 0x206   : > { %1665 = vst.msk [vmem:[%s3129_s26 + $0x70] sm:$0xff] %vm1650_vm3, %v1648_v45 }
 0x207 PF: > { %s15_s18 = sadd.s32 1, %s2127_s18  }
 0x208   : > { %p12_p4 = scmp.ge.s32.totalorder %s15_s18, 6  }
 0x20a   :  { %14 = sbr.rel (!%p12_p4) target bundleno = 1 (0x1), region = 73 }

</bundles_post_ra>
